<compile_context>
chip_gen: v6e
topology: v6e:2x2x1
jax: 0.10.0
libtpu: 0.0.40
codegen_flags: <defaults>
</compile_context>

<pallas_src>
import functools

import jax
import jax.numpy as jnp
from jax.experimental import pallas as pl
from jax.experimental.pallas import tpu as pltpu

XI = 1e-6  # self.XI in the PyTorch module


def _softmax_stats(logits):
    """Numerically-stable softmax and log_softmax along axis=1 (f32)."""
    m = jnp.max(logits, axis=1, keepdims=True)
    e = jnp.exp(logits - m)
    s = jnp.sum(e, axis=1, keepdims=True)
    p = e / s
    logp = (logits - m) - jnp.log(s)
    return p, logp


def _l2_normalize_rows(d):
    # F.normalize(d.view(B,-1), p=2, dim=1): divide by max(||d||_2, 1e-12).
    sq = jnp.sum(d * d, axis=1, keepdims=True)
    return d * jax.lax.rsqrt(jnp.maximum(sq, 1e-24))


def _dot(a_bf16, b_bf16):
    """bf16 x bf16 MXU matmul, f32 accumulation, contraction a[1] x b[0]."""
    return jax.lax.dot_general(a_bf16, b_bf16, (((1,), (0,)), ((), ())),
                               preferred_element_type=jnp.float32)


# ----------------------------------------------------------------------------
# Fused kernel: power iteration (analytic grad of KL wrt d) + final VAT loss.
# Grid = batch tiles ("parallel"); weights use constant index_maps -> one DMA.
# ----------------------------------------------------------------------------
def vat_fused_kernel(x_ref, d0_ref, q_ref,
                     w1_ref, w1t_ref, w2_ref, w2t_ref, b1_ref, b2_ref,
                     loss_ref, *, n_power, xi, epsilon, batch_size):
    bf16 = jnp.bfloat16

    x_bf = x_ref[...].astype(bf16)       # (tb, D)   MXU operand only
    w1 = w1_ref[...]                     # (D, H)    bf16, never upcast
    w1t = w1t_ref[...]                   # (H, D)    bf16, pre-transposed
    w2 = w2_ref[...]                     # (H, C)    bf16
    w2t = w2t_ref[...]                   # (C, H)    bf16, pre-transposed
    b1 = b1_ref[...]                     # (1, H)    f32
    b2 = b2_ref[...]                     # (1, C)    f32
    q_logit = q_ref[...]                 # (tb, C)   f32

    # Fixed target distribution and constants — hoisted out of the loop.
    q, logq = _softmax_stats(q_logit)
    inv_b = jnp.float32(1.0 / batch_size)

    # Linearity split: first-layer response to the clean input computed once;
    # the perturbation contribution is added in f32 so xi=1e-6 survives.
    pre_x = _dot(x_bf, w1) + b1          # (tb, H) f32

    def perturbed_forward(dn_bf, scale):
        # == (x + scale*dn) @ W1 + b1, but with the tiny term kept in f32.
        pre = pre_x + scale * _dot(dn_bf, w1)            # (tb, H) f32
        feat = jnp.maximum(pre, 0.0)                     # ReLU (f32)
        logits = _dot(feat.astype(bf16), w2) + b2        # (tb, C) f32
        return pre, logits

    def power_step(d):
        dn = _l2_normalize_rows(d).astype(bf16)          # (tb, D)
        pre, logits = perturbed_forward(dn, xi)
        p, _ = _softmax_stats(logits)
        # d(mean_b[-sum_c q log_softmax(p)]) / d p_logit = (softmax(p) - q)/B
        g_logit = ((p - q) * inv_b).astype(bf16)         # (tb, C)
        g_feat = _dot(g_logit, w2t)                      # (tb, H) f32
        g_pre = jnp.where(pre > 0.0, g_feat, 0.0)        # ReLU grad (f32)
        return _dot(g_pre.astype(bf16), w1t)             # (tb, D) f32

    d = d0_ref[...]                                      # torch.randn_like(x)
    if n_power <= 2:
        for _ in range(n_power):                         # static unroll
            d = power_step(d)
    else:
        d = jax.lax.fori_loop(0, n_power, lambda _, dd: power_step(dd), d)

    # virtual_adversarial_loss: KL(q || softmax(f(x + eps*normalize(d))))
    r_dir = _l2_normalize_rows(d).astype(bf16)
    _, logits = perturbed_forward(r_dir, epsilon)
    _, logp = _softmax_stats(logits)
    kl_rows = jnp.sum(q * (logq - logp), axis=1, keepdims=True)   # (tb, 1)
    # Per-tile partial sum, already carrying the global 1/B mean factor.
    loss_ref[...] = jnp.sum(kl_rows, axis=0, keepdims=True) * inv_b


# ----------------------------------------------------------------------------
# Init-time parameter packing (NOT per training step): bf16 weights and their
# pre-transposed copies, so the per-call pallas_call sees exactly one DMA per
# operand and the backward dots never need an in-kernel transpose.
# ----------------------------------------------------------------------------
def prepare_vat_params(w1, b1, w2, b2):
    w1 = jnp.asarray(w1, jnp.float32)
    w2 = jnp.asarray(w2, jnp.float32)
    return dict(
        w1=w1.astype(jnp.bfloat16),
        w1t=w1.T.astype(jnp.bfloat16),
        w2=w2.astype(jnp.bfloat16),
        w2t=w2.T.astype(jnp.bfloat16),
        b1=jnp.asarray(b1, jnp.float32).reshape(1, -1),
        b2=jnp.asarray(b2, jnp.float32).reshape(1, -1),
    )


def _pick_batch_tile(b):
    # v6e/v7x MXU likes M>=256, v5e M=128; tiny demo batches -> one full tile.
    for t in (256, 128, 8):
        if b >= t and b % t == 0:
            return t
    return b


def make_vat(n_power, radius, xi=XI):
    n_power = int(n_power)
    radius = float(radius)
    xi = float(xi)

    @jax.jit
    def vat_forward(params, x, logit, d_init):
        """Equivalent of VAT.forward(X, logit) -> scalar vat_loss."""
        b = x.shape[0]
        xf = x.reshape(b, -1)
        d0 = d_init.reshape(b, -1)
        if xf.dtype != jnp.float32:
            xf = xf.astype(jnp.float32)
        if d0.dtype != jnp.float32:
            d0 = d0.astype(jnp.float32)
        q_logit = logit if logit.dtype == jnp.float32 else logit.astype(jnp.float32)

        d_feat = xf.shape[1]
        hid = params["w1"].shape[1]
        ncls = params["w2"].shape[1]
        tb = _pick_batch_tile(b)
        num_tiles = b // tb

        kernel = functools.partial(
            vat_fused_kernel,
            n_power=n_power, xi=xi, epsilon=radius, batch_size=b)

        def row_spec(last):
            return pl.BlockSpec((tb, last), lambda i: (i, 0))

        def rep_spec(shape):
            return pl.BlockSpec(shape, lambda i: (0, 0))   # resident, DMA'd once

        partial_loss = pl.pallas_call(
            kernel,
            out_shape=jax.ShapeDtypeStruct((num_tiles, 1), jnp.float32),
            grid_spec=pltpu.PrefetchScalarGridSpec(
                num_scalar_prefetch=0,
                grid=(num_tiles,),
                in_specs=[
                    row_spec(d_feat),            # x (flattened)
                    row_spec(d_feat),            # d_init
                    row_spec(ncls),              # q_logit
                    rep_spec((d_feat, hid)),     # w1   bf16
                    rep_spec((hid, d_feat)),     # w1^T bf16
                    rep_spec((hid, ncls)),       # w2   bf16
                    rep_spec((ncls, hid)),       # w2^T bf16
                    rep_spec((1, hid)),          # b1
                    rep_spec((1, ncls)),         # b2
                ],
                out_specs=pl.BlockSpec((1, 1), lambda i: (i, 0)),
            ),
            compiler_params=pltpu.CompilerParams(
                dimension_semantics=("parallel",),
                vmem_limit_bytes=32 * 1024 * 1024),
        )(xf, d0, q_logit,
          params["w1"], params["w1t"], params["w2"], params["w2t"],
          params["b1"], params["b2"])

        # Per-tile partials already include the 1/B factor -> sum == batch mean.
        return jnp.sum(partial_loss)

    return vat_forward


# ----------------------------------------------------------------------------
# Pure-JAX reference that mirrors the kernel's math exactly (bf16 MXU operands,
# f32 accumulation, linearity split) for a tight correctness check.
# ----------------------------------------------------------------------------
def _ref_vat(weights_f32, x, logit, d_init, n_power, radius, xi=XI):
    w1, b1, w2, b2 = weights_f32
    bf, f32 = jnp.bfloat16, jnp.float32
    b = x.shape[0]
    xf = x.reshape(b, -1).astype(f32)
    d = d_init.reshape(b, -1).astype(f32)
    w1f = w1.astype(bf).astype(f32)
    w2f = w2.astype(bf).astype(f32)

    def qb(a):  # bf16 quantization of a dot operand, math kept in f32
        return a.astype(bf).astype(f32)

    def norm(v):
        sq = jnp.sum(v * v, axis=1, keepdims=True)
        return v * jax.lax.rsqrt(jnp.maximum(sq, 1e-24))

    q = jax.nn.softmax(logit, axis=1)
    logq = jax.nn.log_softmax(logit, axis=1)
    inv_b = 1.0 / b
    pre_x = qb(xf) @ w1f + b1

    def fwd(dn, scale):
        pre = pre_x + scale * (qb(dn) @ w1f)
        feat = jnp.maximum(pre, 0.0)
        return pre, qb(feat) @ w2f + b2

    for _ in range(n_power):
        dn = norm(d)
        pre, lg = fwd(dn, xi)
        p = jax.nn.softmax(lg, axis=1)
        gl = qb((p - q) * inv_b)
        gp = jnp.where(pre > 0.0, gl @ w2f.T, 0.0)
        d = qb(gp) @ w1f.T
    rd = norm(d)
    _, lg = fwd(rd, radius)
    logp = jax.nn.log_softmax(lg, axis=1)
    return jnp.mean(jnp.sum(q * (logq - logp), axis=1))


if __name__ == "__main__":
    key = jax.random.PRNGKey(0)
    B, C, H, W = 2, 4, 16, 16          # x: (B, C, H, W), NCHW as in PyTorch
    D = C * H * W                       # 1024
    HID = 128                           # extractor feature width
    NCLS = 8                            # classifier logits
    n_power = 1
    radius = 3.5                        # self.epsilon

    k_x, k_w1, k_w2, k_d = jax.random.split(key, 4)
    x = jax.random.normal(k_x, (B, C, H, W), jnp.float32)
    w1 = jax.random.normal(k_w1, (D, HID), jnp.float32) * 0.05
    b1 = jnp.zeros((1, HID), jnp.float32)
    w2 = jax.random.normal(k_w2, (HID, NCLS), jnp.float32) * 0.05
    b2 = jnp.zeros((1, NCLS), jnp.float32)

    # `logit` argument of VAT.forward: clean-pass logits of the same network
    # (computed by the caller in the PyTorch training loop — glue JAX here).
    x_flat = x.reshape(B, -1)
    logit = jnp.maximum(x_flat @ w1 + b1, 0.0) @ w2 + b2               # (B, NCLS)

    # torch.randn_like(x) made deterministic.
    d_init = jax.random.normal(k_d, (B, C, H, W), jnp.float32)

    # One-time init: bf16 + pre-transposed weights (outside the jitted hot path).
    params = prepare_vat_params(w1, b1, w2, b2)

    vat_forward = make_vat(n_power, radius)
    loss = vat_forward(params, x, logit, d_init)
    jax.block_until_ready(loss)
    assert loss.shape == () and bool(jnp.isfinite(loss))

    ref = _ref_vat((w1, b1, w2, b2), x, logit, d_init, n_power, radius)
    assert jnp.allclose(loss, ref, rtol=2e-2, atol=1e-4), (loss, ref)

    print("KERNEL_OK")
</pallas_src>

<mosaic_0001>
module attributes {stable_mosaic.version = 11 : i64} {
  func.func @vat_fused_kernel(%arg0: i32, %arg1: memref<2x1024xf32, #tpu.memory_space<vmem>>, %arg2: memref<2x1024xf32, #tpu.memory_space<vmem>>, %arg3: memref<2x8xf32, #tpu.memory_space<vmem>>, %arg4: memref<1024x128xbf16, #tpu.memory_space<vmem>>, %arg5: memref<128x1024xbf16, #tpu.memory_space<vmem>>, %arg6: memref<128x8xbf16, #tpu.memory_space<vmem>>, %arg7: memref<8x128xbf16, #tpu.memory_space<vmem>>, %arg8: memref<1x128xf32, #tpu.memory_space<vmem>>, %arg9: memref<1x8xf32, #tpu.memory_space<vmem>>, %arg10: memref<1x1xf32, #tpu.memory_space<vmem>>) attributes {dimension_semantics = [#tpu.dimension_semantics<parallel>], iteration_bounds = array<i64: 1>, scalar_prefetch = 0 : i64, scratch_operands = 0 : i64, tpu.core_type = #tpu.core_type<tc>, window_params = [{transform_indices = @transform_0, window_bounds = array<i64: 2, 1024>}, {transform_indices = @transform_1, window_bounds = array<i64: 2, 1024>}, {transform_indices = @transform_2, window_bounds = array<i64: 2, 8>}, {pipeline_mode = #tpu.pipeline_mode<synchronous>, transform_indices = @transform_3, window_bounds = array<i64: 1024, 128>}, {pipeline_mode = #tpu.pipeline_mode<synchronous>, transform_indices = @transform_4, window_bounds = array<i64: 128, 1024>}, {pipeline_mode = #tpu.pipeline_mode<synchronous>, transform_indices = @transform_5, window_bounds = array<i64: 128, 8>}, {pipeline_mode = #tpu.pipeline_mode<synchronous>, transform_indices = @transform_6, window_bounds = array<i64: 8, 128>}, {pipeline_mode = #tpu.pipeline_mode<synchronous>, transform_indices = @transform_7, window_bounds = array<i64: 1, 128>}, {pipeline_mode = #tpu.pipeline_mode<synchronous>, transform_indices = @transform_8, window_bounds = array<i64: 1, 8>}, {transform_indices = @transform_9, window_bounds = array<i64: 1, 1>}]} {
    %c0 = arith.constant 0 : index
    %c0_0 = arith.constant 0 : index
    %0 = vector.load %arg1[%c0, %c0_0] : memref<2x1024xf32, #tpu.memory_space<vmem>>, vector<2x1024xf32>
    %1 = arith.truncf %0 : vector<2x1024xf32> to vector<2x1024xbf16>
    %c0_1 = arith.constant 0 : index
    %c0_2 = arith.constant 0 : index
    %2 = vector.load %arg4[%c0_1, %c0_2] : memref<1024x128xbf16, #tpu.memory_space<vmem>>, vector<1024x128xbf16>
    %c0_3 = arith.constant 0 : index
    %c0_4 = arith.constant 0 : index
    %3 = vector.load %arg5[%c0_3, %c0_4] : memref<128x1024xbf16, #tpu.memory_space<vmem>>, vector<128x1024xbf16>
    %c0_5 = arith.constant 0 : index
    %c0_6 = arith.constant 0 : index
    %4 = vector.load %arg6[%c0_5, %c0_6] : memref<128x8xbf16, #tpu.memory_space<vmem>>, vector<128x8xbf16>
    %c0_7 = arith.constant 0 : index
    %c0_8 = arith.constant 0 : index
    %5 = vector.load %arg7[%c0_7, %c0_8] : memref<8x128xbf16, #tpu.memory_space<vmem>>, vector<8x128xbf16>
    %c0_9 = arith.constant 0 : index
    %c0_10 = arith.constant 0 : index
    %6 = vector.load %arg8[%c0_9, %c0_10] : memref<1x128xf32, #tpu.memory_space<vmem>>, vector<1x128xf32>
    %c0_11 = arith.constant 0 : index
    %c0_12 = arith.constant 0 : index
    %7 = vector.load %arg9[%c0_11, %c0_12] : memref<1x8xf32, #tpu.memory_space<vmem>>, vector<1x8xf32>
    %c0_13 = arith.constant 0 : index
    %c0_14 = arith.constant 0 : index
    %8 = vector.load %arg3[%c0_13, %c0_14] : memref<2x8xf32, #tpu.memory_space<vmem>>, vector<2x8xf32>
    %cst = arith.constant dense<0xFF800000> : vector<2xf32>
    %9 = vector.multi_reduction <maximumf>, %8, %cst [1] : vector<2x8xf32> to vector<2xf32>
    %10 = vector.shape_cast %9 : vector<2xf32> to vector<2x1xf32>
    %11 = vector.broadcast %10 : vector<2x1xf32> to vector<2x8xf32>
    %12 = arith.subf %8, %11 : vector<2x8xf32>
    %13 = math.exp %12 : vector<2x8xf32>
    %cst_15 = arith.constant dense<0.000000e+00> : vector<2xf32>
    %14 = vector.multi_reduction <add>, %13, %cst_15 [1] : vector<2x8xf32> to vector<2xf32>
    %15 = vector.shape_cast %14 : vector<2xf32> to vector<2x1xf32>
    %16 = vector.broadcast %15 : vector<2x1xf32> to vector<2x8xf32>
    %17 = arith.divf %13, %16 : vector<2x8xf32>
    %18 = vector.broadcast %10 : vector<2x1xf32> to vector<2x8xf32>
    %19 = arith.subf %8, %18 : vector<2x8xf32>
    %20 = math.log %15 : vector<2x1xf32>
    %21 = vector.broadcast %20 : vector<2x1xf32> to vector<2x8xf32>
    %22 = arith.subf %19, %21 : vector<2x8xf32>
    %cst_16 = arith.constant dense<0.000000e+00> : vector<2x128xf32>
    %23 = tpu.matmul %1, %2, %cst_16 {dimension_numbers = #tpu.dot_dimension_numbers<[1], [0], [0], [1], [0, 0, 1, 1], [], []>} : vector<2x1024xbf16>, vector<1024x128xbf16>, vector<2x128xf32> -> vector<2x128xf32>
    %24 = vector.broadcast %6 : vector<1x128xf32> to vector<2x128xf32>
    %25 = arith.addf %23, %24 : vector<2x128xf32>
    %c0_17 = arith.constant 0 : index
    %c0_18 = arith.constant 0 : index
    %26 = vector.load %arg2[%c0_17, %c0_18] : memref<2x1024xf32, #tpu.memory_space<vmem>>, vector<2x1024xf32>
    %27 = arith.mulf %26, %26 : vector<2x1024xf32>
    %cst_19 = arith.constant dense<0.000000e+00> : vector<2xf32>
    %28 = vector.multi_reduction <add>, %27, %cst_19 [1] : vector<2x1024xf32> to vector<2xf32>
    %29 = vector.shape_cast %28 : vector<2xf32> to vector<2x1xf32>
    %cst_20 = arith.constant 1.000000e-24 : f32
    %30 = vector.broadcast %cst_20 : f32 to vector<2x1xf32>
    %31 = arith.maximumf %29, %30 : vector<2x1xf32>
    %32 = math.rsqrt %31 : vector<2x1xf32>
    %33 = vector.broadcast %32 : vector<2x1xf32> to vector<2x1024xf32>
    %34 = arith.mulf %26, %33 : vector<2x1024xf32>
    %35 = arith.truncf %34 : vector<2x1024xf32> to vector<2x1024xbf16>
    %cst_21 = arith.constant dense<0.000000e+00> : vector<2x128xf32>
    %36 = tpu.matmul %35, %2, %cst_21 {dimension_numbers = #tpu.dot_dimension_numbers<[1], [0], [0], [1], [0, 0, 1, 1], [], []>} : vector<2x1024xbf16>, vector<1024x128xbf16>, vector<2x128xf32> -> vector<2x128xf32>
    %cst_22 = arith.constant 9.99999997E-7 : f32
    %37 = vector.broadcast %cst_22 : f32 to vector<2x128xf32>
    %38 = arith.mulf %37, %36 : vector<2x128xf32>
    %39 = arith.addf %25, %38 : vector<2x128xf32>
    %cst_23 = arith.constant 0.000000e+00 : f32
    %40 = vector.broadcast %cst_23 : f32 to vector<2x128xf32>
    %41 = arith.maximumf %39, %40 : vector<2x128xf32>
    %42 = arith.truncf %41 : vector<2x128xf32> to vector<2x128xbf16>
    %cst_24 = arith.constant dense<0.000000e+00> : vector<2x8xf32>
    %43 = tpu.matmul %42, %4, %cst_24 {dimension_numbers = #tpu.dot_dimension_numbers<[1], [0], [0], [1], [0, 0, 1, 1], [], []>} : vector<2x128xbf16>, vector<128x8xbf16>, vector<2x8xf32> -> vector<2x8xf32>
    %44 = vector.broadcast %7 : vector<1x8xf32> to vector<2x8xf32>
    %45 = arith.addf %43, %44 : vector<2x8xf32>
    %cst_25 = arith.constant dense<0xFF800000> : vector<2xf32>
    %46 = vector.multi_reduction <maximumf>, %45, %cst_25 [1] : vector<2x8xf32> to vector<2xf32>
    %47 = vector.shape_cast %46 : vector<2xf32> to vector<2x1xf32>
    %48 = vector.broadcast %47 : vector<2x1xf32> to vector<2x8xf32>
    %49 = arith.subf %45, %48 : vector<2x8xf32>
    %50 = math.exp %49 : vector<2x8xf32>
    %cst_26 = arith.constant dense<0.000000e+00> : vector<2xf32>
    %51 = vector.multi_reduction <add>, %50, %cst_26 [1] : vector<2x8xf32> to vector<2xf32>
    %52 = vector.shape_cast %51 : vector<2xf32> to vector<2x1xf32>
    %53 = vector.broadcast %52 : vector<2x1xf32> to vector<2x8xf32>
    %54 = arith.divf %50, %53 : vector<2x8xf32>
    %55 = arith.subf %54, %17 : vector<2x8xf32>
    %cst_27 = arith.constant 5.000000e-01 : f32
    %56 = vector.broadcast %cst_27 : f32 to vector<2x8xf32>
    %57 = arith.mulf %55, %56 : vector<2x8xf32>
    %58 = arith.truncf %57 : vector<2x8xf32> to vector<2x8xbf16>
    %cst_28 = arith.constant dense<0.000000e+00> : vector<2x128xf32>
    %59 = tpu.matmul %58, %5, %cst_28 {dimension_numbers = #tpu.dot_dimension_numbers<[1], [0], [0], [1], [0, 0, 1, 1], [], []>} : vector<2x8xbf16>, vector<8x128xbf16>, vector<2x128xf32> -> vector<2x128xf32>
    %cst_29 = arith.constant 0.000000e+00 : f32
    %60 = vector.broadcast %cst_29 : f32 to vector<2x128xf32>
    %61 = arith.cmpf ogt, %39, %60 : vector<2x128xf32>
    %cst_30 = arith.constant 0.000000e+00 : f32
    %62 = vector.broadcast %cst_30 : f32 to vector<2x128xf32>
    %63 = arith.select %61, %59, %62 : vector<2x128xi1>, vector<2x128xf32>
    %64 = arith.truncf %63 : vector<2x128xf32> to vector<2x128xbf16>
    %cst_31 = arith.constant dense<0.000000e+00> : vector<2x1024xf32>
    %65 = tpu.matmul %64, %3, %cst_31 {dimension_numbers = #tpu.dot_dimension_numbers<[1], [0], [0], [1], [0, 0, 1, 1], [], []>} : vector<2x128xbf16>, vector<128x1024xbf16>, vector<2x1024xf32> -> vector<2x1024xf32>
    %66 = arith.mulf %65, %65 : vector<2x1024xf32>
    %cst_32 = arith.constant dense<0.000000e+00> : vector<2xf32>
    %67 = vector.multi_reduction <add>, %66, %cst_32 [1] : vector<2x1024xf32> to vector<2xf32>
    %68 = vector.shape_cast %67 : vector<2xf32> to vector<2x1xf32>
    %cst_33 = arith.constant 1.000000e-24 : f32
    %69 = vector.broadcast %cst_33 : f32 to vector<2x1xf32>
    %70 = arith.maximumf %68, %69 : vector<2x1xf32>
    %71 = math.rsqrt %70 : vector<2x1xf32>
    %72 = vector.broadcast %71 : vector<2x1xf32> to vector<2x1024xf32>
    %73 = arith.mulf %65, %72 : vector<2x1024xf32>
    %74 = arith.truncf %73 : vector<2x1024xf32> to vector<2x1024xbf16>
    %cst_34 = arith.constant dense<0.000000e+00> : vector<2x128xf32>
    %75 = tpu.matmul %74, %2, %cst_34 {dimension_numbers = #tpu.dot_dimension_numbers<[1], [0], [0], [1], [0, 0, 1, 1], [], []>} : vector<2x1024xbf16>, vector<1024x128xbf16>, vector<2x128xf32> -> vector<2x128xf32>
    %cst_35 = arith.constant 3.500000e+00 : f32
    %76 = vector.broadcast %cst_35 : f32 to vector<2x128xf32>
    %77 = arith.mulf %76, %75 : vector<2x128xf32>
    %78 = arith.addf %25, %77 : vector<2x128xf32>
    %cst_36 = arith.constant 0.000000e+00 : f32
    %79 = vector.broadcast %cst_36 : f32 to vector<2x128xf32>
    %80 = arith.maximumf %78, %79 : vector<2x128xf32>
    %81 = arith.truncf %80 : vector<2x128xf32> to vector<2x128xbf16>
    %cst_37 = arith.constant dense<0.000000e+00> : vector<2x8xf32>
    %82 = tpu.matmul %81, %4, %cst_37 {dimension_numbers = #tpu.dot_dimension_numbers<[1], [0], [0], [1], [0, 0, 1, 1], [], []>} : vector<2x128xbf16>, vector<128x8xbf16>, vector<2x8xf32> -> vector<2x8xf32>
    %83 = vector.broadcast %7 : vector<1x8xf32> to vector<2x8xf32>
    %84 = arith.addf %82, %83 : vector<2x8xf32>
    %cst_38 = arith.constant dense<0xFF800000> : vector<2xf32>
    %85 = vector.multi_reduction <maximumf>, %84, %cst_38 [1] : vector<2x8xf32> to vector<2xf32>
    %86 = vector.shape_cast %85 : vector<2xf32> to vector<2x1xf32>
    %87 = vector.broadcast %86 : vector<2x1xf32> to vector<2x8xf32>
    %88 = arith.subf %84, %87 : vector<2x8xf32>
    %89 = math.exp %88 : vector<2x8xf32>
    %cst_39 = arith.constant dense<0.000000e+00> : vector<2xf32>
    %90 = vector.multi_reduction <add>, %89, %cst_39 [1] : vector<2x8xf32> to vector<2xf32>
    %91 = vector.shape_cast %90 : vector<2xf32> to vector<2x1xf32>
    %92 = vector.broadcast %86 : vector<2x1xf32> to vector<2x8xf32>
    %93 = arith.subf %84, %92 : vector<2x8xf32>
    %94 = math.log %91 : vector<2x1xf32>
    %95 = vector.broadcast %94 : vector<2x1xf32> to vector<2x8xf32>
    %96 = arith.subf %93, %95 : vector<2x8xf32>
    %97 = arith.subf %22, %96 : vector<2x8xf32>
    %98 = arith.mulf %17, %97 : vector<2x8xf32>
    %cst_40 = arith.constant dense<0.000000e+00> : vector<2xf32>
    %99 = vector.multi_reduction <add>, %98, %cst_40 [1] : vector<2x8xf32> to vector<2xf32>
    %100 = vector.shape_cast %99 : vector<2xf32> to vector<2x1xf32>
    %cst_41 = arith.constant dense<0.000000e+00> : vector<1xf32>
    %101 = vector.multi_reduction <add>, %100, %cst_41 [0] : vector<2x1xf32> to vector<1xf32>
    %102 = vector.shape_cast %101 : vector<1xf32> to vector<1x1xf32>
    %cst_42 = arith.constant 5.000000e-01 : f32
    %103 = vector.broadcast %cst_42 : f32 to vector<1x1xf32>
    %104 = arith.mulf %102, %103 : vector<1x1xf32>
    %c0_43 = arith.constant 0 : index
    %c0_44 = arith.constant 0 : index
    %105 = vector.load %arg10[%c0_43, %c0_44] : memref<1x1xf32, #tpu.memory_space<vmem>>, vector<1x1xf32>
    tpu.vector_store %arg10[%c0_43, %c0_44], %104 {strides = array<i32>} : memref<1x1xf32, #tpu.memory_space<vmem>>, vector<1x1xf32>,
    return
  }
  func.func @transform_0(%arg0: i32) -> (i32, i32) {
    %c0_i32 = arith.constant 0 : i32
    %c0_i32_0 = arith.constant 0 : i32
    return %arg0, %c0_i32 : i32, i32
  }
  func.func @transform_1(%arg0: i32) -> (i32, i32) {
    %c0_i32 = arith.constant 0 : i32
    %c0_i32_0 = arith.constant 0 : i32
    return %arg0, %c0_i32 : i32, i32
  }
  func.func @transform_2(%arg0: i32) -> (i32, i32) {
    %c0_i32 = arith.constant 0 : i32
    %c0_i32_0 = arith.constant 0 : i32
    return %arg0, %c0_i32 : i32, i32
  }
  func.func @transform_3(%arg0: i32) -> (i32, i32) {
    %c0_i32 = arith.constant 0 : i32
    %c0_i32_0 = arith.constant 0 : i32
    %c0_i32_1 = arith.constant 0 : i32
    return %c0_i32, %c0_i32_0 : i32, i32
  }
  func.func @transform_4(%arg0: i32) -> (i32, i32) {
    %c0_i32 = arith.constant 0 : i32
    %c0_i32_0 = arith.constant 0 : i32
    %c0_i32_1 = arith.constant 0 : i32
    return %c0_i32, %c0_i32_0 : i32, i32
  }
  func.func @transform_5(%arg0: i32) -> (i32, i32) {
    %c0_i32 = arith.constant 0 : i32
    %c0_i32_0 = arith.constant 0 : i32
    %c0_i32_1 = arith.constant 0 : i32
    return %c0_i32, %c0_i32_0 : i32, i32
  }
  func.func @transform_6(%arg0: i32) -> (i32, i32) {
    %c0_i32 = arith.constant 0 : i32
    %c0_i32_0 = arith.constant 0 : i32
    %c0_i32_1 = arith.constant 0 : i32
    return %c0_i32, %c0_i32_0 : i32, i32
  }
  func.func @transform_7(%arg0: i32) -> (i32, i32) {
    %c0_i32 = arith.constant 0 : i32
    %c0_i32_0 = arith.constant 0 : i32
    %c0_i32_1 = arith.constant 0 : i32
    return %c0_i32, %c0_i32_0 : i32, i32
  }
  func.func @transform_8(%arg0: i32) -> (i32, i32) {
    %c0_i32 = arith.constant 0 : i32
    %c0_i32_0 = arith.constant 0 : i32
    %c0_i32_1 = arith.constant 0 : i32
    return %c0_i32, %c0_i32_0 : i32, i32
  }
  func.func @transform_9(%arg0: i32) -> (i32, i32) {
    %c0_i32 = arith.constant 0 : i32
    %c0_i32_0 = arith.constant 0 : i32
    return %arg0, %c0_i32 : i32, i32
  }
}

</mosaic_0001>

<bundles_post_ra>
// kernel: vat_forward.1
= control target key start
LH: loop header
LB: loop body
LE: loop exit
PB: predicated region body
PF: predicated region fallthrough
CT: control target
= control target key end

     0   :  { %14 = vsyncpa [#allocation3], 0  ;;  %s3399_s0 = inlined_call_operand.vmem [shape: f32[2,1024], index: 0, kind: input, shape index: {}]   ;;  %s3400_s1 = inlined_call_operand.vmem [shape: f32[2,1024], index: 1, kind: input, shape index: {}]   ;;  %s3401_s2 = inlined_call_operand.vmem [shape: f32[2,8], index: 2, kind: input, shape index: {}]   ;;  %s3402_s3 = inlined_call_operand.hbm [shape: bf16[1024,128], index: 3, kind: input, shape index: {}]   ;;  %s3403_s4 = inlined_call_operand.hbm [shape: bf16[128,1024], index: 4, kind: input, shape index: {}]   ;;  %s3404_s5 = inlined_call_operand.vmem [shape: bf16[128,8], index: 5, kind: input, shape index: {}]   ;;  %s3405_s6 = inlined_call_operand.vmem [shape: bf16[8,128], index: 6, kind: input, shape index: {}]   ;;  %s3406_s7 = inlined_call_operand.vmem [shape: f32[1,128], index: 7, kind: input, shape index: {}]   ;;  %s3407_s8 = inlined_call_operand.vmem [shape: f32[1,8], index: 8, kind: input, shape index: {}]   ;;  %s3408_s9 = inlined_call_operand.hbm [shape: f32[1,1], index: 9, kind: output, shape index: {}]  }
   0x1   :  { %15 = vsyncpa [#allocation6], 0 }
   0x2   :  { %16 = vsyncpa [#allocation4], 0  ;;  %s2836_s30 = smov [#allocation2]  }
   0x3   :  { %s28_s10 = sshll.u32 %s2836_s30, 4  ;;  %s29_s10 = int_to_ptr.vmem [resolvable:$true] %s28_s10 }
   0x4   :  { %s2778_s11 = scalar_lea.vmem %s29_s10, 8192  ;;  %p2783_p1 = scmp.lt.s32.totalorder %s29_s10, %s29_s10 }
   0x5   :  { %p2779_p0 = scmp.ne.s32.totalorder %s29_s10, %s2778_s11  ;;  %p2784_p2 = scmp.lt.s32.totalorder %s2778_s11, %s2778_s11 }
   0x7   :  { %p2785_p3 = por %p2784_p2, %p2783_p1 }
   0x9   :  { %p2786_p4 = pnand %p2785_p3, %p2779_p0 }
   0xb   :  { %2789 = shalt.err (!%p2786_p4)
}
   0xc   :  { %s2837_s12 = smov 64   ;;  %s2838_s13 = smov 4  }
   0xd   :  { %34 = dma.hbm_to_vmem [thread:$0]  %s3402_s3, 8192, %s29_s10, [#allocation3], %s2837_s12, %s2837_s12, %s2838_s13  }
   0xe   :  { %s2839_s16 = smov [#allocation5]  }
   0xf   :  { %s40_s17 = sshll.u32 %s2839_s16, 4  ;;  %s41_s17 = int_to_ptr.vmem [resolvable:$true] %s40_s17 }
  0x10   :  { %s2798_s18 = scalar_lea.vmem %s41_s17, 8192  ;;  %p2803_p6 = scmp.lt.s32.totalorder %s41_s17, %s41_s17 }
  0x11   :  { %p2799_p5 = scmp.ne.s32.totalorder %s41_s17, %s2798_s18  ;;  %p2804_p7 = scmp.lt.s32.totalorder %s2798_s18, %s2798_s18 }
  0x13   :  { %p2805_p8 = por %p2804_p7, %p2803_p6 }
  0x15   :  { %p2806_p9 = pnand %p2805_p8, %p2799_p5 }
  0x17   :  { %2809 = shalt.err (!%p2806_p9)
}
  0x18   :  { %s2840_s19 = smov 512   ;;  %s2841_s20 = smov 32  }
  0x19   :  { %46 = dma.hbm_to_vmem [thread:$0]  %s3403_s4, 8192, %s41_s17, [#allocation6], %s2840_s19, %s2840_s19, %s2841_s20  }
  0x1a   :  { %2830 = dma.done.wait [#allocation3], 8192  }
  0x1b   :  { %2831 = vsyncadd [#allocation3], 4294959104 }
  0x1c   :  { %2832 = dma.done.wait [#allocation6], 8192  }
  0x1d   :  { %2833 = vsyncadd [#allocation6], 4294959104  ;;  %v70_v0 = vlaneseq  ;;  %v2842_v1 = vmov 1983009808   ;;  %v2912_v6 = vld [vmem:[%s3400_s1] sm:$0xff]  ;;  %v2917_v7 = vld [vmem:[%s3400_s1 + $0x8] sm:$0xff] }
  0x1e   :  { %v68_v2 = vunpack.c.l.s4 %v2842_v1  ;;  %v895_v8 = vmul.f32 %v2912_v6, %v2912_v6  ;;  %v896_v9 = vmul.f32 %v2917_v7, %v2917_v7  ;;  %v2923_v10 = vld [vmem:[#allocation2 + $0x78] sm:$0xff]   ;;  %vm941_vm0 = vcmask 1041408   ;;  %v2937_v20 = vld [vmem:[#allocation2 + $0x70] sm:$0xff]   ;;  %v2954_v32 = vld [vmem:[#allocation2 + $0x68] sm:$0xff]  }
  0x1f   :  { %v2904_v3 = vshrl.u32 %v70_v0, 7  ;;  %v2925_v11 = vld [vmem:[#allocation2 + $0x38] sm:$0xff]   ;;  %2272 = vmatprep.subr.bf16.mxu0 %v2923_v10  ;;  %v2941_v22 = vld [vmem:[#allocation2 + $0x30] sm:$0xff]   ;;  %v2959_v35 = vld [vmem:[#allocation2 + $0x28] sm:$0xff]   ;;  %vm2845_vm1 = vmmov 0   ;;  %vm328_vm2 = vcmask 58368  }
  0x20   :  { %v69_v4 = vunpack.c.0.s8 %v68_v2  ;;  %v899_v12 = vcombine.high %v895_v8, %v895_v8  ;;  %v2929_v14 = vld [vmem:[#allocation2 + $0xf8] sm:$0xff]   ;;  %2273 = vmatpush3.bf16.msra.mxu0 %v2925_v11  ;;  %v916_v18 = vcombine.high %v896_v9, %v896_v9  ;;  %v2943_v23 = vld [vmem:[#allocation2 + $0xf0] sm:$0xff]   ;;  %v2961_v37 = vld [vmem:[#allocation2 + $0xe8] sm:$0xff]   ;;  %vm1300_vm3 = vcmask 1043456  }
  0x21   :  { %v2932_v15 = vld [vmem:[#allocation2 + $0xb8] sm:$0xff]   ;;  %2294 = vmatprep.subr.bf16.mxu1 %v2929_v14  ;;  %2274 = vmatprep.subr.bf16.mxu0 %v2937_v20  ;;  %v2952_v31 = vld [vmem:[#allocation2 + $0xb0] sm:$0xff]   ;;  %v2965_v40 = vld [vmem:[#allocation2 + $0xa8] sm:$0xff]   ;;  %vm1296_vm4 = vcmask 64512   ;;  %vm2103_vm7 = vcmask 0  }
  0x22   :  { %v2907_v5 = vsub.s32 %v69_v4, %v2904_v3  ;;  %2295 = vmatpush3.bf16.msra.mxu1 %v2932_v15  ;;  %v2968_v42 = vld [vmem:[#allocation2 + $0x60] sm:$0xff]   ;;  %v2982_v50 = vld [vmem:[#allocation2 + $0x58] sm:$0xff]   ;;  %v2994_v55 = vld [vmem:[#allocation2 + $0x50] sm:$0xff]  }
  0x23   :  { %2296 = vmatprep.subr.bf16.mxu1 %v2943_v23  ;;  %v2972_v44 = vld [vmem:[#allocation2 + $0x20] sm:$0xff]   ;;  %v2985_v51 = vld [vmem:[#allocation2 + $0x18] sm:$0xff]   ;;  %v2997_v56 = vld [vmem:[#allocation2 + $0x10] sm:$0xff]  }
  0x24   :  { %v906_v13 = vrot.slane %v895_v8, %v2907_v5  ;;  %v913_v16 = vrot.slane %v899_v12, %v2907_v5  ;;  %v923_v19 = vrot.slane %v896_v9, %v2907_v5  ;;  %2275 = vmatpush3.bf16.msra.mxu0 %v2941_v22  ;;  %v930_v28 = vrot.slane %v916_v18, %v2907_v5  ;;  %v2975_v46 = vld [vmem:[#allocation2 + $0xe0] sm:$0xff]   ;;  %v2988_v53 = vld [vmem:[#allocation2 + $0xd8] sm:$0xff]   ;;  %v3000_v57 = vld [vmem:[#allocation2 + $0xd0] sm:$0xff]  }
  0x25   :  { %2276 = vmatprep.subr.bf16.mxu0 %v2954_v32  ;;  %v2979_v48 = vld [vmem:[#allocation2 + $0xa0] sm:$0xff]   ;;  %v2991_v54 = vld [vmem:[#allocation2 + $0x98] sm:$0xff]   ;;  %v3003_v58 = vld [vmem:[#allocation2 + $0x90] sm:$0xff]  }
  0x26   :  { %v914_v17 = vcombine.high %v906_v13, %v906_v13  ;;  %v942_v21 = vsel %vm941_vm0, %v906_v13, 0.0  ;;  %v915_v24 = vcombine.high %v913_v16, %v913_v16  ;;  %v945_v26 = vsel %vm941_vm0, %v913_v16, 0.0  ;;  %2297 = vmatpush3.bf16.msra.mxu1 %v2952_v31  ;;  %v3006_v59 = vld [vmem:[#allocation2 + $0x48] sm:$0xff]   ;;  %v3018_v63 = vld [vmem:[#allocation2 + $0x40] sm:$0xff]   ;;  %v3034_v9 = vld [vmem:[#allocation2 + $0x178] sm:$0xff]  }
  0x27   :  { %v931_v29 = vcombine.high %v923_v19, %v923_v19  ;;  %v949_v34 = vsel %vm941_vm0, %v923_v19, 0.0  ;;  %v932_v38 = vcombine.high %v930_v28, %v930_v28  ;;  %2298 = vmatprep.subr.bf16.mxu1 %v2961_v37  ;;  %v953_v43 = vsel %vm941_vm0, %v930_v28, 0.0  ;;  %v3009_v60 = vld [vmem:[#allocation2 + $0x8] sm:$0xff]   ;;  %v3021_v0 = vld [vmem:[#allocation2] sm:$0xff]   ;;  %v3041_v19 = vld [vmem:[#allocation2 + $0x138] sm:$0xff]  }
  0x28   :  { %v943_v25 = vsel %vm941_vm0, %v914_v17, 0.0  ;;  %v947_v30 = vsel %vm941_vm0, %v915_v24, 0.0  ;;  %2277 = vmatpush3.bf16.msra.mxu0 %v2959_v35  ;;  %v3012_v61 = vld [vmem:[#allocation2 + $0xc8] sm:$0xff]   ;;  %v3024_v1 = vld [vmem:[#allocation2 + $0xc0] sm:$0xff]   ;;  %v3039_v17 = vld [vmem:[#allocation2 + $0x1f8] sm:$0xff]  }
  0x29   :  { %v944_v27 = vadd.f32 %v943_v25, %v942_v21  ;;  %v951_v39 = vsel %vm941_vm0, %v931_v29, 0.0  ;;  %2278 = vmatprep.subr.bf16.mxu0 %v2968_v42  ;;  %v955_v47 = vsel %vm941_vm0, %v932_v38, 0.0  ;;  %v3015_v62 = vld [vmem:[#allocation2 + $0x88] sm:$0xff]   ;;  %v3027_v2 = vld [vmem:[#allocation2 + $0x80] sm:$0xff]   ;;  %v3044_v25 = vld [vmem:[#allocation2 + $0x1b8] sm:$0xff]  }
  0x2a   :  { %2299 = vmatpush3.bf16.msra.mxu1 %v2965_v40  ;;  %v62_v4 = vld [vmem:[%s3399_s0] sm:$0xff]  ;;  %v3048_v29 = vld [vmem:[#allocation2 + $0x130] sm:$0xff]   ;;  %v3062_v38 = vld [vmem:[#allocation2 + $0x1e8] sm:$0xff]  }
  0x2b   :  { %v946_v33 = vadd.f32 %v945_v26, %v944_v27  ;;  %2300 = vmatprep.subr.bf16.mxu1 %v2975_v46  ;;  %v73_v8 = vrot.slane %v62_v4, %v2907_v5  ;;  %v66_v12 = vcombine.high %v62_v4, %v62_v4  ;;  %v3046_v27 = vld [vmem:[#allocation2 + $0x170] sm:$0xff]   ;;  %v3086_v4 = vld [vmem:[#allocation2 + $0x1d8] sm:$0xff]  }
  0x2c   :  { %2279 = vmatpush3.bf16.msra.mxu0 %v2972_v44  ;;  %3427 = vst [vmem:[#allocation16_spill] sm:$0xff] %v3086_v4 }
  0x2d   :  { %v948_v36 = vadd.f32 %v947_v30, %v946_v33  ;;  %2280 = vmatprep.subr.bf16.mxu0 %v2982_v50  ;;  %v81_v13 = vcombine.high %v73_v8, %v73_v8  ;;  %v80_v16 = vrot.slane %v66_v12, %v2907_v5  ;;  %v108_v18 = vpack.c.bf16 %v73_v8, %v73_v8  ;;  %v3050_v30 = vld [vmem:[#allocation2 + $0x1f0] sm:$0xff]   ;;  %v3089_v8 = vld [vmem:[#allocation2 + $0x198] sm:$0xff]  }
  0x2e   :  { %2301 = vmatpush3.bf16.msra.mxu1 %v2979_v48  ;;  %v3053_v33 = vld [vmem:[#allocation2 + $0x1b0] sm:$0xff]   ;;  %3428 = vst [vmem:[#allocation17_spill] sm:$0xff] %v3089_v8 }
  0x2f   :  { %v950_v41 = vadd.f32 %v949_v34, %v948_v36  ;;  %2302 = vmatprep.subr.bf16.mxu1 %v2988_v53  ;;  %v109_v21 = vpack.c.bf16 %v81_v13, %v81_v13  ;;  %v82_v24 = vcombine.high %v80_v16, %v80_v16  ;;  %v110_v26 = vpack.c.bf16 %v80_v16, %v80_v16  ;;  %v3056_v34 = vld [vmem:[#allocation2 + $0x168] sm:$0xff]   ;;  %v3092_v12 = vld [vmem:[#allocation2 + $0x150] sm:$0xff]  }
  0x30   :  { %2281 = vmatpush3.bf16.msra.mxu0 %v2985_v51  ;;  %v3059_v36 = vld [vmem:[#allocation2 + $0x128] sm:$0xff]   ;;  %3429 = vst [vmem:[#allocation18_spill] sm:$0xff] %v3092_v12  ;;  %v3095_v13 = vld [vmem:[#allocation2 + $0x110] sm:$0xff]  }
  0x31   :  { %v952_v45 = vadd.f32 %v951_v39, %v950_v41  ;;  %2282 = vmatprep.subr.bf16.mxu0 %v2994_v55  ;;  %765 = vmatprep.mubr.bf16.mxu0 %v109_v21  ;;  %v111_v28 = vpack.c.bf16 %v82_v24, %v82_v24  ;;  %v3065_v39 = vld [vmem:[#allocation2 + $0x1a8] sm:$0xff]   ;;  %v3068_v41 = vld [vmem:[#allocation2 + $0x160] sm:$0xff]   ;;  %3430 = vst [vmem:[#allocation19_spill] sm:$0xff] %v3095_v13  ;;  %v3098_v16 = vld [vmem:[#allocation2 + $0x1d0] sm:$0xff]  }
  0x32   :  { %2303 = vmatpush3.bf16.msra.mxu1 %v2991_v54  ;;  %3431 = vst [vmem:[#allocation20_spill] sm:$0xff] %v3098_v16  ;;  %v3104_v21 = vld [vmem:[#allocation2 + $0x148] sm:$0xff]  }
  0x33   :  { %v954_v49 = vadd.f32 %v953_v43, %v952_v45  ;;  %2304 = vmatprep.subr.bf16.mxu1 %v3000_v57  ;;  %805 = vmatprep.mubr.bf16.mxu1 %v111_v28  ;;  %v3071_v43 = vld [vmem:[#allocation2 + $0x120] sm:$0xff]   ;;  %3433 = vst [vmem:[#allocation22_spill] sm:$0xff] %v3104_v21  ;;  %v3107_v24 = vld [vmem:[#allocation2 + $0x108] sm:$0xff]  }
  0x34   :  { %2283 = vmatpush3.bf16.msra.mxu0 %v2997_v56  ;;  %3422 = vst [vmem:[#allocation11_spill] sm:$0xff] %v3071_v43  ;;  %v3074_v45 = vld [vmem:[#allocation2 + $0x1e0] sm:$0xff]   ;;  %v3113_v28 = vld [vmem:[#allocation2 + $0x188] sm:$0xff]  }
  0x35   :  { %v956_v52 = vadd.f32 %v955_v47, %v954_v49  ;;  %2284 = vmatprep.subr.bf16.mxu0 %v3006_v59  ;;  %3423 = vst [vmem:[#allocation12_spill] sm:$0xff] %v3074_v45  ;;  %v3077_v47 = vld [vmem:[#allocation2 + $0x1a0] sm:$0xff]   ;;  %v3080_v49 = vld [vmem:[#allocation2 + $0x158] sm:$0xff]  }
  0x36   :  { %2305 = vmatpush3.bf16.msra.mxu1 %v3003_v58  ;;  %3424 = vst [vmem:[#allocation13_spill] sm:$0xff] %v3077_v47  ;;  %3425 = vst [vmem:[#allocation14_spill] sm:$0xff] %v3080_v49 }
  0x37   :  { %957 = vadd.xlane.f32.xlu0 %v956_v52  ;;  %2306 = vmatprep.subr.bf16.mxu1 %v3012_v61  ;;  %v3083_v52 = vld [vmem:[#allocation2 + $0x118] sm:$0xff]  }
  0x38   :  { %2285 = vmatpush3.bf16.msra.mxu0 %v3009_v60  ;;  %3426 = vst [vmem:[#allocation15_spill] sm:$0xff] %v3083_v52 }
  0x39   :  { %2286 = vmatprep.subr.bf16.mxu0 %v3018_v63 }
  0x3a   :  { %2307 = vmatpush3.bf16.msra.mxu1 %v3015_v62 }
  0x3b   :  { %2308 = vmatprep.subr.bf16.mxu1 %v3024_v1 }
  0x3c   :  { %2287 = vmatpush3.bf16.msra.mxu0 %v3021_v0 }
  0x3d   :  { %2316 = vmatprep.subr.bf16.mxu0 %v3034_v9 }
  0x3e   :  { %2309 = vmatpush3.bf16.msra.mxu1 %v3027_v2 }
  0x3f   :  { %2338 = vmatprep.subr.bf16.mxu1 %v3039_v17  ;;  %766 = vmatmul.mubr.bf16.vlgmr.msra.gmra.mxu0 %v108_v18  ;;  %v3101_v18 = vld [vmem:[#allocation2 + $0x190] sm:$0xff]  }
  0x40   :  { %2317 = vmatpush3.bf16.msra.mxu0 %v3041_v19  ;;  %3432 = vst [vmem:[#allocation21_spill] sm:$0xff] %v3101_v18 }
  0x41   :  { %806 = vmatmul.mubr.bf16.vlgmr.msra.gmra.mxu1 %v110_v26  ;;  %2318 = vmatprep.subr.bf16.mxu0 %v3046_v27  ;;  %v3110_v26 = vld [vmem:[#allocation2 + $0x1c8] sm:$0xff]  }
  0x42   :  { %2339 = vmatpush3.bf16.msra.mxu1 %v3044_v25  ;;  %3434 = vst [vmem:[#allocation23_spill] sm:$0xff] %v3110_v26 }
  0x43   :  { %2340 = vmatprep.subr.bf16.mxu1 %v3050_v30 }
  0x44   :  { %2319 = vmatpush3.bf16.msra.mxu0 %v3048_v29 }
  0x45   :  { %2320 = vmatprep.subr.bf16.mxu0 %v3056_v34 }
  0x46   :  { %2341 = vmatpush3.bf16.msra.mxu1 %v3053_v33 }
  0x47   :  { %2342 = vmatprep.subr.bf16.mxu1 %v3062_v38 }
  0x48   :  { %2321 = vmatpush3.bf16.msra.mxu0 %v3059_v36 }
  0x49   :  { %2322 = vmatprep.subr.bf16.mxu0 %v3068_v41 }
  0x4a   :  { %2343 = vmatpush3.bf16.msra.mxu1 %v3065_v39 }
  0x4b   :  { %2344 = vmatprep.subr.bf16.mxu1 %v3074_v45 }
  0x4c   :  { %2323 = vmatpush3.bf16.msra.mxu0 %v3071_v43 }
  0x4d   :  { %2324 = vmatprep.subr.bf16.mxu0 %v3080_v49 }
  0x4e   :  { %2345 = vmatpush3.bf16.msra.mxu1 %v3077_v47 }
  0x4f   :  { %2346 = vmatprep.subr.bf16.mxu1 %v3086_v4 }
  0x50   :  { %2325 = vmatpush3.bf16.msra.mxu0 %v3083_v52  ;;  %v3116_v52 = vld [vmem:[#allocation2 + $0x140] sm:$0xff]  }
  0x51   :  { %2326 = vmatprep.subr.bf16.mxu0 %v3092_v12  ;;  %v3119_v12 = vld [vmem:[#allocation2 + $0x100] sm:$0xff]  }
  0x52   :  { %2347 = vmatpush3.bf16.msra.mxu1 %v3089_v8  ;;  %v63_v8 = vld [vmem:[%s3399_s0 + $0x8] sm:$0xff] }
  0x53   :  { %2348 = vmatprep.subr.bf16.mxu1 %v3098_v16  ;;  %v3125_v16 = vld [vmem:[#allocation2 + $0x1c0] sm:$0xff]   ;;  %v83_v4 = vcombine.high %v63_v8, %v63_v8 }
  0x54   :  { %2327 = vmatpush3.bf16.msra.mxu0 %v3095_v13  ;;  %v90_v13 = vrot.slane %v63_v8, %v2907_v5 }
  0x55   :  { %2328 = vmatprep.subr.bf16.mxu0 %v3104_v21  ;;  %v3129_v21 = vld [vmem:[#allocation2 + $0x180] sm:$0xff]   ;;  %v97_v47 = vrot.slane %v83_v4, %v2907_v5  ;;  %v3214_v4 = vld [vmem:[%s3404_s5 + $0x38] sm:$0xff]  }
  0x56   :  { %2349 = vmatpush3.bf16.msra.mxu1 %v3101_v18  ;;  %v98_v18 = vcombine.high %v90_v13, %v90_v13 }
  0x57   :  { %2350 = vmatprep.subr.bf16.mxu1 %v3110_v26  ;;  %v112_v26 = vpack.c.bf16 %v90_v13, %v90_v13  ;;  %v99_v43 = vcombine.high %v97_v47, %v97_v47  ;;  %v114_v45 = vpack.c.bf16 %v97_v47, %v97_v47  ;;  %v3222_v13 = vld [vmem:[%s3404_s5 + $0x30] sm:$0xff]  }
  0x58   :  { %2329 = vmatpush3.bf16.msra.mxu0 %v3107_v24  ;;  %v113_v49 = vpack.c.bf16 %v98_v18, %v98_v18  ;;  %v3229_v18 = vld [vmem:[%s3404_s5 + $0x28] sm:$0xff]  }
  0x59   :  { %2330 = vmatprep.subr.bf16.mxu0 %v3116_v52  ;;  %v115_v8 = vpack.c.bf16 %v99_v43, %v99_v43 }
  0x5a   :  { %2351 = vmatpush3.bf16.msra.mxu1 %v3113_v28  ;;  %845 = vmatprep.mubr.bf16.mxu0 %v113_v49 }
  0x5b   :  { %2352 = vmatprep.subr.bf16.mxu1 %v3125_v16  ;;  %885 = vmatprep.mubr.bf16.mxu1 %v115_v8 }
  0x5c   :  { %2331 = vmatpush3.bf16.msra.mxu0 %v3119_v12 }
  0x5d   :  { %2360 = vmatprep.subr.bf16.mxu0 %v2923_v10 }
  0x5e   :  { %2353 = vmatpush3.bf16.msra.mxu1 %v3129_v21 }
  0x5f   :  { %846 = vmatmul.mubr.bf16.vlgmr.msra.gmra.mxu0 %v112_v26  ;;  %2382 = vmatprep.subr.bf16.mxu1 %v2929_v14  ;;  %v2843_v14 = vmov 269488144  }
  0x60   :  { %2361 = vmatpush3.bf16.msra.mxu0 %v2925_v11 }
  0x61   :  { %886 = vmatmul.mubr.bf16.vlgmr.msra.gmra.mxu1 %v114_v45  ;;  %2362 = vmatprep.subr.bf16.mxu0 %v2937_v20 }
  0x62   :  { %2383 = vmatpush3.bf16.msra.mxu1 %v2932_v15  ;;  %v963_v15 = vunpack.c.l.s4 %v2843_v14 }
  0x63   :  { %2384 = vmatprep.subr.bf16.mxu1 %v2943_v23 }
  0x64   :  { %2363 = vmatpush3.bf16.msra.mxu0 %v2941_v22  ;;  %v964_v20 = vunpack.c.0.s8 %v963_v15 }
  0x65   :  { %2364 = vmatprep.subr.bf16.mxu0 %v2954_v32 }
  0x66   :  { %2385 = vmatpush3.bf16.msra.mxu1 %v2952_v31  ;;  %v967_v22 = vsub.s32 %v964_v20, %v2904_v3 }
  0x67   :  { %2386 = vmatprep.subr.bf16.mxu1 %v2961_v37 }
  0x68   :  { %2365 = vmatpush3.bf16.msra.mxu0 %v2959_v35 }
  0x69   :  { %2366 = vmatprep.subr.bf16.mxu0 %v2968_v42 }
  0x6a   :  { %2387 = vmatpush3.bf16.msra.mxu1 %v2965_v40 }
  0x6b   :  { %2388 = vmatprep.subr.bf16.mxu1 %v2975_v46 }
  0x6c   :  { %2367 = vmatpush3.bf16.msra.mxu0 %v2972_v44 }
  0x6d   :  { %2368 = vmatprep.subr.bf16.mxu0 %v2982_v50 }
  0x6e   :  { %2389 = vmatpush3.bf16.msra.mxu1 %v2979_v48 }
  0x6f   :  { %2390 = vmatprep.subr.bf16.mxu1 %v2988_v53 }
  0x70   :  { %2369 = vmatpush3.bf16.msra.mxu0 %v2985_v51 }
  0x71   :  { %2370 = vmatprep.subr.bf16.mxu0 %v2994_v55 }
  0x72   :  { %2391 = vmatpush3.bf16.msra.mxu1 %v2991_v54 }
  0x73   :  { %2392 = vmatprep.subr.bf16.mxu1 %v3000_v57 }
  0x74   :  { %2371 = vmatpush3.bf16.msra.mxu0 %v2997_v56 }
  0x75   :  { %2372 = vmatprep.subr.bf16.mxu0 %v3006_v59  ;;  %v3437_v59 = vld [vmem:[#allocation14_spill] sm:$0xff] }
  0x76   :  { %2393 = vmatpush3.bf16.msra.mxu1 %v3003_v58  ;;  %v3436_v58 = vld [vmem:[#allocation11_spill] sm:$0xff] }
  0x77   :  { %2394 = vmatprep.subr.bf16.mxu1 %v3012_v61  ;;  %v3439_v61 = vld [vmem:[#allocation16_spill] sm:$0xff] }
  0x78   :  { %2373 = vmatpush3.bf16.msra.mxu0 %v3009_v60  ;;  %v3438_v60 = vld [vmem:[#allocation13_spill] sm:$0xff] }
  0x79   :  { %2374 = vmatprep.subr.bf16.mxu0 %v3018_v63  ;;  %v3441_v63 = vld [vmem:[#allocation18_spill] sm:$0xff] }
  0x7a   :  { %2395 = vmatpush3.bf16.msra.mxu1 %v3015_v62  ;;  %v3440_v62 = vld [vmem:[#allocation15_spill] sm:$0xff] }
  0x7b   :  { %2396 = vmatprep.subr.bf16.mxu1 %v3024_v1  ;;  %v3443_v1 = vld [vmem:[#allocation20_spill] sm:$0xff] }
  0x7c   :  { %2375 = vmatpush3.bf16.msra.mxu0 %v3021_v0  ;;  %v3442_v0 = vld [vmem:[#allocation17_spill] sm:$0xff] }
  0x7d   :  { %2404 = vmatprep.subr.bf16.mxu0 %v3034_v9  ;;  %v3445_v9 = vld [vmem:[#allocation22_spill] sm:$0xff] }
  0x7e   :  { %2397 = vmatpush3.bf16.msra.mxu1 %v3027_v2  ;;  %v3444_v2 = vld [vmem:[#allocation19_spill] sm:$0xff] }
  0x7f   :  { %2426 = vmatprep.subr.bf16.mxu1 %v3039_v17  ;;  %v3446_v17 = vld [vmem:[#allocation21_spill] sm:$0xff] }
  0xc0   :  { %v958_v10 = vpop.xlane.xlu0 %957 }
  0xc1   :  { %v959_v11 = vmax.f32 %v958_v10, 1e-24  ;;  %v3236_v10 = vld [vmem:[%s3404_s5 + $0x20] sm:$0xff]  }
  0xc3   :  { %2688 = vrsqrt.f32 %v959_v11 }
  0xd0   :  { %v2689_v23 = vpop.eup %2688 }
  0xd1   :  { %v968_v31 = vrot.slane %v2689_v23, %v967_v22 }
  0xd3   :  { %v970_v32 = vmul.f32 %v968_v31, %v2912_v6  ;;  %v971_v35 = vmul.f32 %v968_v31, %v2917_v7  ;;  %v3246_v31 = vld [vmem:[%s3404_s5 + $0x18] sm:$0xff]  }
  0xd5   :  { %v981_v37 = vrot.slane %v970_v32, %v2907_v5  ;;  %v974_v40 = vcombine.high %v970_v32, %v970_v32  ;;  %v998_v42 = vrot.slane %v971_v35, %v2907_v5  ;;  %v991_v44 = vcombine.high %v971_v35, %v971_v35  ;;  %v3253_v32 = vld [vmem:[%s3404_s5 + $0x10] sm:$0xff]   ;;  %v3260_v35 = vld [vmem:[%s3404_s5 + $0x8] sm:$0xff]  }
  0xd7   :  { %v989_v46 = vcombine.high %v981_v37, %v981_v37  ;;  %v988_v48 = vrot.slane %v974_v40, %v2907_v5  ;;  %v1006_v50 = vcombine.high %v998_v42, %v998_v42  ;;  %v1005_v51 = vrot.slane %v991_v44, %v2907_v5  ;;  %v3435_v5 = vld [vmem:[#allocation12_spill] sm:$0xff]  ;;  %v327_v40 = vld [vmem:[%s3401_s2] sm:$0x3] }
  0xd8   :  { %v1016_v54 = vpack.c.bf16 %v981_v37, %v981_v37  ;;  %v3267_v37 = vld [vmem:[%s3404_s5] sm:$0xff]  }
  0xd9   :  { %v1017_v53 = vpack.c.bf16 %v989_v46, %v989_v46  ;;  %v990_v3 = vcombine.high %v988_v48, %v988_v48  ;;  %v1007_v55 = vcombine.high %v1005_v51, %v1005_v51  ;;  %v1021_v7 = vpack.c.bf16 %v1006_v50, %v1006_v50 }
  0xda   :  { %v1018_v56 = vpack.c.bf16 %v988_v48, %v988_v48 }
  0xdb   :  { %1056 = vmatprep.mubr.bf16.mxu0 %v1017_v53  ;;  %v1019_v6 = vpack.c.bf16 %v990_v3, %v990_v3  ;;  %v1023_v57 = vpack.c.bf16 %v1007_v55, %v1007_v55 }
  0xdc   :  { %1057 = vmatmul.mubr.bf16.vlgmr.msra.gmra.mxu0 %v1016_v54 }
  0xdd   :  { %2405 = vmatpush3.bf16.msra.mxu0 %v3041_v19  ;;  %1096 = vmatprep.mubr.bf16.mxu1 %v1019_v6  ;;  %v3447_v19 = vld [vmem:[#allocation23_spill] sm:$0xff] }
  0xde   :  { %1136 = vmatprep.mubr.bf16.mxu0 %v1021_v7  ;;  %1097 = vmatmul.mubr.bf16.vlgmr.msra.gmra.mxu1 %v1018_v56 }
  0xdf   :  { %2427 = vmatpush3.bf16.msra.mxu1 %v3044_v25  ;;  %2406 = vmatprep.subr.bf16.mxu0 %v3046_v27  ;;  %v1020_v25 = vpack.c.bf16 %v998_v42, %v998_v42  ;;  %v1022_v27 = vpack.c.bf16 %v1005_v51, %v1005_v51  ;;  %v329_v42 = vsel %vm328_vm2, %v327_v40, -inf }
  0xe0   :  { %1176 = vmatprep.mubr.bf16.mxu1 %v1023_v57  ;;  %2428 = vmatprep.subr.bf16.mxu1 %v3050_v30  ;;  %v2121_v30 = vld [vmem:[%s3406_s7] ss:$0 sm:$0xff] }
  0xe1   :  { %2407 = vmatpush3.bf16.msra.mxu0 %v3048_v29  ;;  %330 = vmax.xlane.f32.xlu0 %v329_v42 }
  0xe2   :  { %2408 = vmatprep.subr.bf16.mxu0 %v3056_v34 }
  0xe3   :  { %2429 = vmatpush3.bf16.msra.mxu1 %v3053_v33 }
  0xe4   :  { %2430 = vmatprep.subr.bf16.mxu1 %v3062_v38 }
  0xe5   :  { %2409 = vmatpush3.bf16.msra.mxu0 %v3059_v36 }
  0xe6   :  { %2410 = vmatprep.subr.bf16.mxu0 %v3068_v41 }
  0xe7   :  { %2431 = vmatpush3.bf16.msra.mxu1 %v3065_v39 }
  0xe8   :  { %2432 = vmatprep.subr.bf16.mxu1 %v3435_v5 }
  0xe9   :  { %2411 = vmatpush3.bf16.msra.mxu0 %v3436_v58 }
  0xea   :  { %2412 = vmatprep.subr.bf16.mxu0 %v3437_v59 }
  0xeb   :  { %2433 = vmatpush3.bf16.msra.mxu1 %v3438_v60 }
  0xec   :  { %2434 = vmatprep.subr.bf16.mxu1 %v3439_v61 }
  0xed   :  { %2413 = vmatpush3.bf16.msra.mxu0 %v3440_v62 }
  0xee   :  { %2414 = vmatprep.subr.bf16.mxu0 %v3441_v63 }
  0xef   :  { %2435 = vmatpush3.bf16.msra.mxu1 %v3442_v0 }
  0xf0   :  { %2436 = vmatprep.subr.bf16.mxu1 %v3443_v1 }
  0xf1   :  { %2415 = vmatpush3.bf16.msra.mxu0 %v3444_v2 }
  0xf2   :  { %2416 = vmatprep.subr.bf16.mxu0 %v3445_v9 }
  0xf3   :  { %2437 = vmatpush3.bf16.msra.mxu1 %v3446_v17 }
  0xf4   :  { %2438 = vmatprep.subr.bf16.mxu1 %v3447_v19 }
  0xf5   :  { %2417 = vmatpush3.bf16.msra.mxu0 %v3107_v24 }
  0xf6   :  { %2418 = vmatprep.subr.bf16.mxu0 %v3116_v52 }
  0xf7   :  { %2439 = vmatpush3.bf16.msra.mxu1 %v3113_v28 }
  0xf8   :  { %2440 = vmatprep.subr.bf16.mxu1 %v3125_v16 }
  0xf9   :  { %2419 = vmatpush3.bf16.msra.mxu0 %v3119_v12  ;;  %v2844_v12 = vmov 0.0  }
  0xfa   :  { %2556 = vmatprep.subr.bf16.mxu0 %v2844_v12 }
  0xfb   :  { %2441 = vmatpush3.bf16.msra.mxu1 %v3129_v21 }
  0xfc   :  { %1137 = vmatmul.mubr.bf16.vlgmr.msra.gmra.mxu0 %v1020_v25  ;;  %2576 = vmatprep.subr.bf16.mxu1 %v2844_v12 }
  0xfd   :  { %2557 = vmatpush3.bf16.msra.mxu0 %v3214_v4  ;;  %2572 = vmatprep.mubr.msk.bf16.mxu0 %vm2845_vm1, %v2844_v12 }
  0xfe   :  { %1177 = vmatmul.mubr.bf16.vlgmr.msra.gmra.mxu1 %v1022_v27  ;;  %2558 = vmatprep.subr.bf16.mxu0 %v2844_v12 }
  0xff   :  { %v2288_v29 = vpop.f32.mrf.mxu0  ;;  %2578 = vmatprep.mubr.msk.bf16.mxu1 %vm2845_vm1, %v2844_v12 }
 0x101   :  { %v2289_v33 = vpop.f32.mrf.mxu0  ;;  %v2310_v34 = vpop.f32.mrf.mxu1  ;;  %2559 = vmatpush3.bf16.msra.mxu0 %v3222_v13 }
 0x102   :  { %v2290_v36 = vadd.f32 %v2289_v33, %v2288_v29  ;;  %2560 = vmatprep.subr.bf16.mxu0 %v2844_v12  ;;  %v3288_v33 = vld [vmem:[%s3407_s8] ss:$0 sm:$0xff] }
 0x103   :  { %v2291_v38 = vpop.f32.mrf.mxu0  ;;  %v2311_v39 = vpop.f32.mrf.mxu1 }
 0x104   :  { %v768_v41 = vadd.f32 %v2290_v36, %v2121_v30  ;;  %v2312_v43 = vadd.f32 %v2311_v39, %v2310_v34 }
 0x105   :  { %v2292_v45 = vpop.f32.mrf.mxu0  ;;  %v2313_v47 = vpop.f32.mrf.mxu1  ;;  %2561 = vmatpush3.bf16.msra.mxu0 %v3229_v18 }
 0x106   :  { %v808_v49 = vadd.f32 %v2312_v43, %v768_v41  ;;  %2562 = vmatprep.subr.bf16.mxu0 %v2844_v12 }
 0x107   :  { %v2314_v52 = vpop.f32.mrf.mxu1 }
 0x109   :  { %2563 = vmatpush3.bf16.msra.mxu0 %v3236_v10 }
 0x10a   :  { %2564 = vmatprep.subr.bf16.mxu0 %v2844_v12 }
 0x10d   :  { %2565 = vmatpush3.bf16.msra.mxu0 %v3246_v31 }
 0x10e   :  { %2566 = vmatprep.subr.bf16.mxu0 %v2844_v12 }
 0x111   :  { %2567 = vmatpush3.bf16.msra.mxu0 %v3253_v32 }
 0x112   :  { %2568 = vmatprep.subr.bf16.mxu0 %v2844_v12 }
 0x115   :  { %2569 = vmatpush3.bf16.msra.mxu0 %v3260_v35 }
 0x116   :  { %2570 = vmatprep.subr.bf16.mxu0 %v2844_v12 }
 0x119   :  { %2571 = vmatpush3.bf16.msra.mxu0 %v3267_v37 }
 0x11f   :  { %v2332_v16 = vpop.f32.mrf.mxu0 }
 0x121   :  { %v2333_v21 = vpop.f32.mrf.mxu0  ;;  %v2354_v24 = vpop.f32.mrf.mxu1 }
 0x122   :  { %v2334_v26 = vadd.f32 %v2333_v21, %v2332_v16 }
 0x123   :  { %v2355_v28 = vpop.f32.mrf.mxu1  ;;  %v2335_v8 = vpop.f32.mrf.mxu0 }
 0x124   :  { %v848_v11 = vadd.f32 %v2334_v26, %v808_v49  ;;  %v2356_v14 = vadd.f32 %v2355_v28, %v2354_v24  ;;  %v324_v26 = vld [vmem:[%s3405_s6] sm:$0xf]  ;;  %s2847_s6 = smov [#allocation7]  }
 0x125   :  { %v2336_v15 = vpop.f32.mrf.mxu0  ;;  %v2357_v20 = vpop.f32.mrf.mxu1  ;;  %v1302_v28 = vsel %vm1300_vm3, %v324_v26, 0  ;;  %v3303_v8 = vld [vmem:[#allocation5 + $0x1c0] sm:$0xff]  ;;  %s2111_s4 = sshll.u32 %s2847_s6, 4  ;;  %s2112_s4 = int_to_ptr.vmem [resolvable:$true] %s2111_s4 }
 0x126   :  { %v3239_v22 = vadd.f32 %v2356_v14, %v848_v11  ;;  %2577 = vmatpush3.bf16.msra.mxu1 %v1302_v28  ;;  %v3305_v11 = vld [vmem:[#allocation5 + $0x1e0] sm:$0xff]  ;;  %v301_v14 = vld [vmem:[#allocation5 + $0x1c8] sm:$0xff]  ;;  %s2810_s1 = scalar_lea.vmem %s2112_s4, 16  ;;  %s2814_s25 = scalar_lea.vmem %s2112_s4, 32 }
 0x127   :  { %v2358_v23 = vpop.f32.mrf.mxu1  ;;  %v2252_v15 = vcombine.low %v3303_v8, %v3305_v11  ;;  %v2253_v20 = vcombine.high %v3303_v8, %v3305_v11  ;;  %v284_v28 = vld [vmem:[#allocation5 + $0x140] sm:$0xff]  ;;  %p2811_p10 = scmp.ne.s32.totalorder %s2112_s4, %s2810_s1  ;;  %p2815_p11 = scmp.lt.s32.totalorder %s2112_s4, %s2112_s4 }
 0x128   :  { %v305_v23 = vld [vmem:[#allocation5 + $0x1e8] sm:$0xff]  ;;  %p2816_p12 = scmp.lt.s32.totalorder %s2814_s25, %s2810_s1 }
 0x129   :  { %v2255_v42 = vcombine.high %v301_v14, %v305_v23  ;;  %1667 = vmatprep.subr.bf16.mxu1 %v2253_v20 }
 0x12a   :  { %p2817_p13 = por %p2816_p12, %p2815_p11 }
 0x12b   :  { %1708 = vmatprep.subr.bf16.mxu0 %v2255_v42 }
 0x12c   :  { %p2818_p0 = pnand %p2817_p13, %p2811_p10 }
 0x16a   :  { %v331_v27 = vpop.xlane.xlu0 %330 }
 0x16b   :  { %v3282_v29 = vsub.f32 %v327_v40, %v331_v27  ;;  %v2254_v40 = vcombine.low %v301_v14, %v305_v23  ;;  %v288_v14 = vld [vmem:[#allocation5 + $0x160] sm:$0xff] }
 0x16c   :  { %v280_v23 = vld [vmem:[#allocation5 + $0x120] sm:$0xff] }
 0x16d   :  { %v333_v30 = vmul.f32 1.442695, %v3282_v29 }
 0x16f   :  { %2690 = vpow2.f32 %v333_v30 }
 0x17c   :  { %v3291_v38 = vpop.eup %2690 }
 0x17d   :  { %v335_v45 = vsel %vm328_vm2, %v3291_v38, 0.0 }
 0x19c   :  { %v2376_v44 = vpop.f32.mrf.mxu0 }
 0x19e   :  { %v2377_v46 = vpop.f32.mrf.mxu0  ;;  %v2398_v48 = vpop.f32.mrf.mxu1 }
 0x19f   :  { %v2378_v7 = vadd.f32 %v2377_v46, %v2376_v44  ;;  %v293_v44 = vld [vmem:[#allocation5 + $0x188] sm:$0xff] }
 0x1a0   :  { %v2379_v50 = vpop.f32.mrf.mxu0  ;;  %v2399_v51 = vpop.f32.mrf.mxu1  ;;  %v297_v46 = vld [vmem:[#allocation5 + $0x1a8] sm:$0xff] }
 0x1a1   :  { %v2400_v55 = vadd.f32 %v2399_v51, %v2398_v48  ;;  %v2247_v48 = vcombine.high %v293_v44, %v297_v46  ;;  %v2246_v50 = vcombine.low %v293_v44, %v297_v46  ;;  %v285_v51 = vld [vmem:[#allocation5 + $0x148] sm:$0xff]  ;;  %v268_v44 = vld [vmem:[#allocation5 + $0xc0] sm:$0xff] }
 0x1a2   :  { %v2380_v53 = vpop.f32.mrf.mxu0  ;;  %v2401_v3 = vpop.f32.mrf.mxu1  ;;  %v272_v46 = vld [vmem:[#allocation5 + $0xe0] sm:$0xff] }
 0x1a3   :  { %v1099_v5 = vadd.f32 %v2400_v55, %v2378_v7  ;;  %v289_v53 = vld [vmem:[#allocation5 + $0x168] sm:$0xff]  ;;  %v2220_v8 = vcombine.low %v268_v44, %v272_v46 }
 0x1a4   :  { %v2402_v54 = vpop.f32.mrf.mxu1  ;;  %v2239_v3 = vcombine.high %v285_v51, %v289_v53  ;;  %v277_v55 = vld [vmem:[#allocation5 + $0x108] sm:$0xff] }
 0x1a5   :  { %v2238_v54 = vcombine.low %v285_v51, %v289_v53  ;;  %v260_v51 = vld [vmem:[#allocation5 + $0x80] sm:$0xff] }
 0x1a6   :  { %v264_v53 = vld [vmem:[#allocation5 + $0xa0] sm:$0xff] }
 0x1a7   :  { %v2213_v11 = vcombine.high %v260_v51, %v264_v53 }
 0x1bc   :  { %v2420_v6 = vpop.f32.mrf.mxu0 }
 0x1be   :  { %v2421_v56 = vpop.f32.mrf.mxu0  ;;  %v2442_v57 = vpop.f32.mrf.mxu1 }
 0x1bf   :  { %v2422_v58 = vadd.f32 %v2421_v56, %v2420_v6  ;;  %v281_v6 = vld [vmem:[#allocation5 + $0x128] sm:$0xff] }
 0x1c0   :  { %v2423_v59 = vpop.f32.mrf.mxu0  ;;  %v2443_v60 = vpop.f32.mrf.mxu1  ;;  %v2231_v7 = vcombine.high %v277_v55, %v281_v6  ;;  %v2230_v56 = vcombine.low %v277_v55, %v281_v6  ;;  %v244_v6 = vld [vmem:[#allocation5] sm:$0xff] }
 0x1c1   :  { %v1139_v61 = vadd.f32 %v2422_v58, %v1099_v5  ;;  %v2444_v62 = vadd.f32 %v2443_v60, %v2442_v57  ;;  %v269_v57 = vld [vmem:[#allocation5 + $0xc8] sm:$0xff] }
 0x1c2   :  { %v2424_v63 = vpop.f32.mrf.mxu0  ;;  %v2445_v0 = vpop.f32.mrf.mxu1  ;;  %v273_v5 = vld [vmem:[#allocation5 + $0xe8] sm:$0xff] }
 0x1c3   :  { %v1179_v1 = vadd.f32 %v2444_v62, %v1139_v61  ;;  %v2223_v58 = vcombine.high %v269_v57, %v273_v5  ;;  %v2222_v59 = vcombine.low %v269_v57, %v273_v5  ;;  %v261_v60 = vld [vmem:[#allocation5 + $0x88] sm:$0xff] }
 0x1c4   :  { %v2446_v2 = vpop.f32.mrf.mxu1  ;;  %v265_v61 = vld [vmem:[#allocation5 + $0xa8] sm:$0xff] }
 0x1c5   :  { %v1184_v9 = vmul.f32 1e-06, %v1179_v1  ;;  %v2215_v62 = vcombine.high %v261_v60, %v265_v61  ;;  %v2214_v63 = vcombine.low %v261_v60, %v265_v61  ;;  %v253_v0 = vld [vmem:[#allocation5 + $0x48] sm:$0xff]  ;;  %v303_v60 = vld [vmem:[#allocation5 + $0x1d8] sm:$0xff] }
 0x1c6   :  { %v257_v1 = vld [vmem:[#allocation5 + $0x68] sm:$0xff] }
 0x1c7   :  { %v3279_v17 = vadd.f32 %v1184_v9, %v3239_v22  ;;  %v2207_v2 = vcombine.high %v253_v0, %v257_v1  ;;  %v2206_v9 = vcombine.low %v253_v0, %v257_v1  ;;  %v2846_v0 = vmov 0  }
 0x1c9   :  { %v1186_v19 = vmax.f32 %v3279_v17, 0.0  ;;  %vm1344_vm5 = vcmp.gt.f32.partialorder %v3279_v17, 0.0 }
 0x1ca   :  { %vm3325_vm6 = vmpackc.low %vm1344_vm5, %vm1344_vm5 }
 0x1cb   :  { %v1187_v25 = vpack.c.bf16 %v1186_v19, %v1186_v19  ;;  %v245_v19 = vld [vmem:[#allocation5 + $0x8] sm:$0xff] }
 0x1cd   :  { %2573 = vmatmul.mubr.bf16.vlgmr.msra.gmra.mxu0 %v1187_v25  ;;  %v249_v25 = vld [vmem:[#allocation5 + $0x28] sm:$0xff] }
 0x1ce   :  { %1709 = vmatpush1.bf16.msra.mxu0 %v2254_v40  ;;  %v2199_v27 = vcombine.high %v245_v19, %v249_v25  ;;  %v2198_v30 = vcombine.low %v245_v19, %v249_v25  ;;  %v2236_v40 = vcombine.low %v284_v28, %v288_v14  ;;  %1740 = vmatprep.mubr.bf16.mxu0 %v2846_v0  ;;  %v298_v19 = vld [vmem:[#allocation5 + $0x1b0] sm:$0xff]  ;;  %v295_v25 = vld [vmem:[#allocation5 + $0x198] sm:$0xff] }
 0x1cf   :  { %1710 = vmatprep.subr.bf16.mxu0 %v2247_v48 }
 0x1d2   :  { %1711 = vmatpush1.bf16.msra.mxu0 %v2246_v50  ;;  %v2221_v50 = vcombine.high %v268_v44, %v272_v46 }
 0x1d3   :  { %1712 = vmatprep.subr.bf16.mxu0 %v2239_v3  ;;  %v256_v3 = vld [vmem:[#allocation5 + $0x60] sm:$0xff] }
 0x1d6   :  { %1713 = vmatpush1.bf16.msra.mxu0 %v2238_v54  ;;  %v2212_v54 = vcombine.low %v260_v51, %v264_v53  ;;  %v270_v51 = vld [vmem:[#allocation5 + $0xd0] sm:$0xff] }
 0x1d7   :  { %1714 = vmatprep.subr.bf16.mxu0 %v2231_v7  ;;  %v248_v7 = vld [vmem:[#allocation5 + $0x20] sm:$0xff]  ;;  %v274_v53 = vld [vmem:[#allocation5 + $0xf0] sm:$0xff] }
 0x1d8   :  { %v2197_v57 = vcombine.high %v244_v6, %v248_v7  ;;  %v2196_v5 = vcombine.low %v244_v6, %v248_v7  ;;  %v262_v6 = vld [vmem:[#allocation5 + $0x90] sm:$0xff] }
 0x1d9   :  { %v266_v7 = vld [vmem:[#allocation5 + $0xb0] sm:$0xff] }
 0x1da   :  { %1715 = vmatpush1.bf16.msra.mxu0 %v2230_v56 }
 0x1db   :  { %1716 = vmatprep.subr.bf16.mxu0 %v2223_v58  ;;  %v302_v58 = vld [vmem:[#allocation5 + $0x1d0] sm:$0xff] }
 0x1de   :  { %1717 = vmatpush1.bf16.msra.mxu0 %v2222_v59  ;;  %v306_v59 = vld [vmem:[#allocation5 + $0x1f0] sm:$0xff] }
 0x1df   :  { %1718 = vmatprep.subr.bf16.mxu0 %v2215_v62  ;;  %v2256_v61 = vcombine.low %v302_v58, %v306_v59  ;;  %v2257_v62 = vcombine.high %v302_v58, %v306_v59  ;;  %v2217_v59 = vcombine.high %v262_v6, %v266_v7 }
 0x1e2   :  { %1719 = vmatpush1.bf16.msra.mxu0 %v2214_v63  ;;  %v307_v63 = vld [vmem:[#allocation5 + $0x1f8] sm:$0xff] }
 0x1e3   :  { %1720 = vmatprep.subr.bf16.mxu0 %v2207_v2  ;;  %v2258_v1 = vcombine.low %v303_v60, %v307_v63  ;;  %v2259_v2 = vcombine.high %v303_v60, %v307_v63  ;;  %v255_v63 = vld [vmem:[#allocation5 + $0x58] sm:$0xff] }
 0x1e6   :  { %1721 = vmatpush1.bf16.msra.mxu0 %v2206_v9  ;;  %v294_v9 = vld [vmem:[#allocation5 + $0x190] sm:$0xff] }
 0x1e7   :  { %1722 = vmatprep.subr.bf16.mxu0 %v2199_v27  ;;  %v299_v27 = vld [vmem:[#allocation5 + $0x1b8] sm:$0xff] }
 0x1ea   :  { %1723 = vmatpush1.bf16.msra.mxu0 %v2198_v30 }
 0x1eb   :  { %1790 = vmatprep.subr.bf16.mxu0 %v2259_v2 }
 0x28d   :  { %v1276_v34 = vpop.f32.mrf.mxu0 }
 0x28e   :  { %v1277_v36 = vadd.f32 %v3288_v33, %v1276_v34 }
 0x28f   :  { %v2574_v39 = vpop.f32.mrf.mxu0 }
 0x290   :  { %v1282_v41 = vsel %vm328_vm2, %v1277_v36, -inf }
 0x291   :  { %1283 = vmax.xlane.f32.xlu1 %v1282_v41  ;;  %v1279_v43 = vpop.f32.mrf.mxu0 }
 0x293   :  { %v2575_v47 = vpop.f32.mrf.mxu0 }
 0x295   :  { %336 = vadd.xlane.f32.xlu1 %v335_v45 }
 0x31a   :  { %v1284_v49 = vpop.xlane.xlu1 %1283 }
 0x31b   :  { %v1285_v52 = vsub.f32 %v1277_v36, %v1284_v49  ;;  %v292_v49 = vld [vmem:[#allocation5 + $0x180] sm:$0xff] }
 0x31d   :  { %v1286_v16 = vmul.f32 1.442695, %v1285_v52  ;;  %v296_v52 = vld [vmem:[#allocation5 + $0x1a0] sm:$0xff] }
 0x31e   :  { %v3311_v34 = vpop.xlane.xlu1 %336  ;;  %v2245_v26 = vcombine.high %v292_v49, %v296_v52  ;;  %v2244_v20 = vcombine.low %v292_v49, %v296_v52  ;;  %v290_v52 = vld [vmem:[#allocation5 + $0x170] sm:$0xff] }
 0x31f   :  { %2692 = vpow2.f32 %v1286_v16 }
 0x320   :  { %2694 = vrcp.f32 %v3311_v34 }
 0x32c   :  { %v3296_v21 = vpop.eup %2692 }
 0x32d   :  { %v1288_v24 = vsel %vm328_vm2, %v3296_v21, 0.0  ;;  %v2695_v39 = vpop.eup %2694 }
 0x32e   :  { %1289 = vadd.xlane.f32.xlu0 %v1288_v24  ;;  %v3316_v45 = vmul.f32 %v2695_v39, %v3291_v38  ;;  %v276_v38 = vld [vmem:[#allocation5 + $0x100] sm:$0xff]  ;;  %v2717_v39 = vld [vmem:[#allocation2 + $0xa8] sm:$0xff]  }
 0x32f   :  { %v2229_v42 = vcombine.high %v276_v38, %v280_v23  ;;  %v2228_v48 = vcombine.low %v276_v38, %v280_v23  ;;  %v282_v23 = vld [vmem:[#allocation5 + $0x130] sm:$0xff] }
 0x3b7   :  { %v1290_v36 = vpop.xlane.xlu0 %1289 }
 0x3b8   :  { %2696 = vrcp.f32 %v1290_v36 }
 0x3c5   :  { %v2697_v41 = vpop.eup %2696 }
 0x3c6   :  { %v1292_v43 = vmul.f32 %v2697_v41, %v3296_v21  ;;  %v2237_v21 = vcombine.high %v284_v28, %v288_v14  ;;  %v2249_v41 = vcombine.high %v294_v9, %v298_v19  ;;  %v2250_v28 = vcombine.low %v295_v25, %v299_v27 }
 0x3c8   :  { %v1293_v47 = vsub.f32 %v1292_v43, %v3316_v45  ;;  %v2251_v43 = vcombine.high %v295_v25, %v299_v27  ;;  %v246_v25 = vld [vmem:[#allocation5 + $0x10] sm:$0xff] }
 0x3c9   :  { %v250_v27 = vld [vmem:[#allocation5 + $0x30] sm:$0xff] }
 0x3ca   :  { %v1294_v16 = vmul.f32 0.5, %v1293_v47  ;;  %v286_v47 = vld [vmem:[#allocation5 + $0x150] sm:$0xff] }
 0x3cb   :  { %v2241_v14 = vcombine.high %v286_v47, %v290_v52  ;;  %v2240_v44 = vcombine.low %v286_v47, %v290_v52 }
 0x3cc   :  { %v1295_v24 = vpack.c.bf16 %v1294_v16, %v1294_v16  ;;  %v287_v16 = vld [vmem:[#allocation5 + $0x158] sm:$0xff] }
 0x3ce   :  { %2579 = vmatmul.mubr.msk.bf16.vlgmr.msra.gmra.mxu1 %vm1296_vm4, %v1295_v24  ;;  %v291_v24 = vld [vmem:[#allocation5 + $0x178] sm:$0xff] }
 0x3cf   :  { %1668 = vmatpush1.bf16.msra.mxu1 %v2252_v15  ;;  %v252_v15 = vld [vmem:[#allocation5 + $0x40] sm:$0xff]  ;;  %1699 = vmatprep.mubr.bf16.mxu1 %v2846_v0  ;;  %v2242_v46 = vcombine.low %v287_v16, %v291_v24 }
 0x3d0   :  { %1669 = vmatprep.subr.bf16.mxu1 %v2245_v26  ;;  %v2205_v55 = vcombine.high %v252_v15, %v256_v3  ;;  %v2204_v56 = vcombine.low %v252_v15, %v256_v3  ;;  %v2248_v26 = vcombine.low %v294_v9, %v298_v19 }
 0x3d3   :  { %1670 = vmatpush1.bf16.msra.mxu1 %v2244_v20  ;;  %v2243_v20 = vcombine.high %v287_v16, %v291_v24  ;;  %v2200_v16 = vcombine.low %v246_v25, %v250_v27 }
 0x3d4   :  { %1671 = vmatprep.subr.bf16.mxu1 %v2237_v21  ;;  %v278_v21 = vld [vmem:[#allocation5 + $0x110] sm:$0xff] }
 0x3d5   :  { %v2232_v15 = vcombine.low %v278_v21, %v282_v23 }
 0x3d7   :  { %1672 = vmatpush1.bf16.msra.mxu1 %v2236_v40  ;;  %v279_v40 = vld [vmem:[#allocation5 + $0x118] sm:$0xff] }
 0x3d8   :  { %1673 = vmatprep.subr.bf16.mxu1 %v2229_v42  ;;  %v283_v42 = vld [vmem:[#allocation5 + $0x138] sm:$0xff] }
 0x3d9   :  { %v2234_v3 = vcombine.low %v279_v40, %v283_v42 }
 0x3db   :  { %1674 = vmatpush1.bf16.msra.mxu1 %v2228_v48  ;;  %v2233_v48 = vcombine.high %v278_v21, %v282_v23  ;;  %v2711_v21 = vld [vmem:[#allocation2 + $0xf0] sm:$0xff]  }
 0x3dc   :  { %1675 = vmatprep.subr.bf16.mxu1 %v2221_v50  ;;  %v2235_v50 = vcombine.high %v279_v40, %v283_v42  ;;  %v2713_v23 = vld [vmem:[#allocation2 + $0xb0] sm:$0xff]   ;;  %v2714_v40 = vld [vmem:[#allocation2 + $0x68] sm:$0xff]  }
 0x3dd   :  { %v2715_v42 = vld [vmem:[#allocation2 + $0xe8] sm:$0xff]  }
 0x3df   :  { %1676 = vmatpush1.bf16.msra.mxu1 %v2220_v8  ;;  %v271_v8 = vld [vmem:[#allocation5 + $0xd8] sm:$0xff] }
 0x3e0   :  { %1677 = vmatprep.subr.bf16.mxu1 %v2213_v11  ;;  %v275_v11 = vld [vmem:[#allocation5 + $0xf8] sm:$0xff] }
 0x3e1   :  { %v2226_v58 = vcombine.low %v271_v8, %v275_v11 }
 0x3e3   :  { %1678 = vmatpush1.bf16.msra.mxu1 %v2212_v54  ;;  %v2225_v54 = vcombine.high %v270_v51, %v274_v53 }
 0x3e4   :  { %1679 = vmatprep.subr.bf16.mxu1 %v2205_v55  ;;  %v2227_v55 = vcombine.high %v271_v8, %v275_v11  ;;  %v2724_v8 = vld [vmem:[#allocation2 + $0x18] sm:$0xff]  }
 0x3e5   :  { %v2725_v11 = vld [vmem:[#allocation2 + $0x98] sm:$0xff]  }
 0x3e7   :  { %1680 = vmatpush1.bf16.msra.mxu1 %v2204_v56  ;;  %v263_v56 = vld [vmem:[#allocation5 + $0x98] sm:$0xff] }
 0x3e8   :  { %1681 = vmatprep.subr.bf16.mxu1 %v2197_v57  ;;  %v267_v57 = vld [vmem:[#allocation5 + $0xb8] sm:$0xff] }
 0x3e9   :  { %v2219_v60 = vcombine.high %v263_v56, %v267_v57  ;;  %v2218_v2 = vcombine.low %v263_v56, %v267_v57  ;;  %v2732_v56 = vld [vmem:[#allocation2 + $0x8] sm:$0xff]  }
 0x3ea   :  { %v2733_v57 = vld [vmem:[#allocation2 + $0x88] sm:$0xff]  }
 0x3eb   :  { %1682 = vmatpush1.bf16.msra.mxu1 %v2196_v5  ;;  %v2224_v5 = vcombine.low %v270_v51, %v274_v53  ;;  %v2722_v51 = vld [vmem:[#allocation2 + $0x58] sm:$0xff]  }
 0x3ec   :  { %1749 = vmatprep.subr.bf16.mxu1 %v2257_v62  ;;  %v258_v62 = vld [vmem:[#allocation5 + $0x70] sm:$0xff]  ;;  %v2723_v53 = vld [vmem:[#allocation2 + $0xd8] sm:$0xff]  }
 0x48e   :  { %v1338_v30 = vpop.f32.mrf.mxu1 }
 0x48f   :  { %v3323_v36 = vpack.c.bf16 %v1338_v30, %v1338_v30  ;;  %v247_v30 = vld [vmem:[#allocation5 + $0x18] sm:$0xff] }
 0x490   :  { %v2580_v49 = vpop.f32.mrf.mxu1 }
 0x491   :  { %2262 = vmatmul.mubr.msk.bf16.vlgmr.msra.gmra.mxu1 %vm3325_vm6, %v3323_v36  ;;  %2265 = vmatmul.mubr.msk.bf16.vlgmr.msra.gmra.mxu0 %vm3325_vm6, %v3323_v36  ;;  %v2201_v49 = vcombine.high %v246_v25, %v250_v27 }
 0x492   :  { %1750 = vmatpush1.bf16.msra.mxu1 %v2256_v61  ;;  %1791 = vmatpush1.bf16.msra.mxu0 %v2258_v1  ;;  %v1341_v17 = vpop.f32.mrf.mxu1  ;;  %v254_v61 = vld [vmem:[#allocation5 + $0x50] sm:$0xff]  ;;  %v2216_v1 = vcombine.low %v262_v6, %v266_v7  ;;  %v2730_v6 = vld [vmem:[#allocation2 + $0x48] sm:$0xff]  }
 0x493   :  { %1751 = vmatprep.subr.bf16.mxu1 %v2249_v41  ;;  %1792 = vmatprep.subr.bf16.mxu0 %v2251_v43  ;;  %v2209_v9 = vcombine.high %v254_v61, %v258_v62  ;;  %v251_v41 = vld [vmem:[#allocation5 + $0x38] sm:$0xff]  ;;  %v2208_v43 = vcombine.low %v254_v61, %v258_v62  ;;  %v2731_v7 = vld [vmem:[#allocation2 + $0xc8] sm:$0xff]  }
 0x494   :  { %v2581_v38 = vpop.f32.mrf.mxu1  ;;  %1781 = vmatprep.mubr.bf16.mxu1 %v2846_v0  ;;  %1822 = vmatprep.mubr.bf16.mxu0 %v2846_v0  ;;  %v259_v0 = vld [vmem:[#allocation5 + $0x78] sm:$0xff]  ;;  %v2203_v52 = vcombine.high %v247_v30, %v251_v41  ;;  %v2202_v24 = vcombine.low %v247_v30, %v251_v41 }
 0x495   :  { %v2211_v19 = vcombine.high %v255_v63, %v259_v0  ;;  %v2210_v47 = vcombine.low %v255_v63, %v259_v0  ;;  %v2706_v17 = vld [vmem:[#allocation2 + $0x78] sm:$0xff]   ;;  %v2712_v38 = vld [vmem:[#allocation2 + $0x30] sm:$0xff]  }
 0x496   :  { %1752 = vmatpush1.bf16.msra.mxu1 %v2248_v26  ;;  %1793 = vmatpush1.bf16.msra.mxu0 %v2250_v28  ;;  %v2707_v26 = vld [vmem:[#allocation2 + $0xf8] sm:$0xff]  }
 0x497   :  { %1753 = vmatprep.subr.bf16.mxu1 %v2241_v14  ;;  %1794 = vmatprep.subr.bf16.mxu0 %v2243_v20  ;;  %v2708_v28 = vld [vmem:[#allocation2 + $0x38] sm:$0xff]   ;;  %v2710_v20 = vld [vmem:[#allocation2 + $0x70] sm:$0xff]  }
 0x498   :  { %v2709_v14 = vld [vmem:[#allocation2 + $0xb8] sm:$0xff]  }
 0x499   :  { %v2738_v61 = vld [vmem:[#allocation2 + $0x178] sm:$0xff]  }
 0x49a   :  { %1754 = vmatpush1.bf16.msra.mxu1 %v2240_v44  ;;  %1795 = vmatpush1.bf16.msra.mxu0 %v2242_v46  ;;  %v2716_v44 = vld [vmem:[#allocation2 + $0x28] sm:$0xff]   ;;  %v2719_v46 = vld [vmem:[#allocation2 + $0xe0] sm:$0xff]   ;;  %v2739_v62 = vld [vmem:[#allocation2 + $0x1f8] sm:$0xff]  }
 0x49b   :  { %1755 = vmatprep.subr.bf16.mxu1 %v2233_v48  ;;  %1796 = vmatprep.subr.bf16.mxu0 %v2235_v50  ;;  %v2720_v48 = vld [vmem:[#allocation2 + $0x20] sm:$0xff]  }
 0x49c   :  { %v2721_v50 = vld [vmem:[#allocation2 + $0xa0] sm:$0xff]  }
 0x49e   :  { %1756 = vmatpush1.bf16.msra.mxu1 %v2232_v15  ;;  %1797 = vmatpush1.bf16.msra.mxu0 %v2234_v3  ;;  %v2726_v15 = vld [vmem:[#allocation2 + $0x50] sm:$0xff]  }
 0x49f   :  { %1757 = vmatprep.subr.bf16.mxu1 %v2225_v54  ;;  %1798 = vmatprep.subr.bf16.mxu0 %v2227_v55  ;;  %v2727_v3 = vld [vmem:[#allocation2 + $0xd0] sm:$0xff]  }
 0x4a0   :  { %v2728_v54 = vld [vmem:[#allocation2 + $0x10] sm:$0xff]  }
 0x4a1   :  { %v2729_v55 = vld [vmem:[#allocation2 + $0x90] sm:$0xff]  }
 0x4a2   :  { %1758 = vmatpush1.bf16.msra.mxu1 %v2224_v5  ;;  %1799 = vmatpush1.bf16.msra.mxu0 %v2226_v58  ;;  %v2734_v5 = vld [vmem:[#allocation2 + $0x40] sm:$0xff]  }
 0x4a3   :  { %1759 = vmatprep.subr.bf16.mxu1 %v2217_v59  ;;  %1800 = vmatprep.subr.bf16.mxu0 %v2219_v60  ;;  %v2735_v58 = vld [vmem:[#allocation2 + $0xc0] sm:$0xff]  }
 0x4a4   :  { %v2736_v59 = vld [vmem:[#allocation2] sm:$0xff]  }
 0x4a5   :  { %v2737_v60 = vld [vmem:[#allocation2 + $0x80] sm:$0xff]  }
 0x4a6   :  { %1760 = vmatpush1.bf16.msra.mxu1 %v2216_v1  ;;  %1801 = vmatpush1.bf16.msra.mxu0 %v2218_v2 }
 0x4a7   :  { %1761 = vmatprep.subr.bf16.mxu1 %v2209_v9  ;;  %1802 = vmatprep.subr.bf16.mxu0 %v2211_v19 }
 0x4aa   :  { %1762 = vmatpush1.bf16.msra.mxu1 %v2208_v43  ;;  %1803 = vmatpush1.bf16.msra.mxu0 %v2210_v47 }
 0x4ab   :  { %1763 = vmatprep.subr.bf16.mxu1 %v2201_v49  ;;  %1804 = vmatprep.subr.bf16.mxu0 %v2203_v52 }
 0x4ae   :  { %1764 = vmatpush1.bf16.msra.mxu1 %v2200_v16  ;;  %1805 = vmatpush1.bf16.msra.mxu0 %v2202_v24 }
 0x4af   :  { %2459 = vmatprep.subr.bf16.mxu1 %v2706_v17  ;;  %2481 = vmatprep.subr.bf16.mxu0 %v2707_v26 }
 0x4b1   :  { %2268 = vmatmul.mubr.msk.bf16.vlgmr.msra.gmra.mxu1 %vm3325_vm6, %v3323_v36  ;;  %2271 = vmatmul.mubr.msk.bf16.vlgmr.msra.gmra.mxu0 %vm3325_vm6, %v3323_v36  ;;  %v2718_v36 = vld [vmem:[#allocation2 + $0x60] sm:$0xff]  }
 0x4b2   :  { %2460 = vmatpush3.bf16.msra.mxu1 %v2708_v28  ;;  %2482 = vmatpush3.bf16.msra.mxu0 %v2709_v14 }
 0x4b3   :  { %2461 = vmatprep.subr.bf16.mxu1 %v2710_v20  ;;  %2483 = vmatprep.subr.bf16.mxu0 %v2711_v21 }
 0x4b6   :  { %2462 = vmatpush3.bf16.msra.mxu1 %v2712_v38  ;;  %2484 = vmatpush3.bf16.msra.mxu0 %v2713_v23 }
 0x4b7   :  { %2463 = vmatprep.subr.bf16.mxu1 %v2714_v40  ;;  %2485 = vmatprep.subr.bf16.mxu0 %v2715_v42 }
 0x4ba   :  { %2464 = vmatpush3.bf16.msra.mxu1 %v2716_v44  ;;  %2486 = vmatpush3.bf16.msra.mxu0 %v2717_v39 }
 0x4bb   :  { %2465 = vmatprep.subr.bf16.mxu1 %v2718_v36  ;;  %2487 = vmatprep.subr.bf16.mxu0 %v2719_v46 }
 0x4be   :  { %2466 = vmatpush3.bf16.msra.mxu1 %v2720_v48  ;;  %2488 = vmatpush3.bf16.msra.mxu0 %v2721_v50 }
 0x4bf   :  { %2467 = vmatprep.subr.bf16.mxu1 %v2722_v51  ;;  %2489 = vmatprep.subr.bf16.mxu0 %v2723_v53 }
 0x4c2   :  { %2468 = vmatpush3.bf16.msra.mxu1 %v2724_v8  ;;  %2490 = vmatpush3.bf16.msra.mxu0 %v2725_v11 }
 0x4c3   :  { %2469 = vmatprep.subr.bf16.mxu1 %v2726_v15  ;;  %2491 = vmatprep.subr.bf16.mxu0 %v2727_v3 }
 0x4c6   :  { %2470 = vmatpush3.bf16.msra.mxu1 %v2728_v54  ;;  %2492 = vmatpush3.bf16.msra.mxu0 %v2729_v55 }
 0x4c7   :  { %2471 = vmatprep.subr.bf16.mxu1 %v2730_v6  ;;  %2493 = vmatprep.subr.bf16.mxu0 %v2731_v7 }
 0x4ca   :  { %2472 = vmatpush3.bf16.msra.mxu1 %v2732_v56  ;;  %2494 = vmatpush3.bf16.msra.mxu0 %v2733_v57 }
 0x4cb   :  { %2473 = vmatprep.subr.bf16.mxu1 %v2734_v5  ;;  %2495 = vmatprep.subr.bf16.mxu0 %v2735_v58 }
 0x4ce   :  { %2474 = vmatpush3.bf16.msra.mxu1 %v2736_v59  ;;  %2496 = vmatpush3.bf16.msra.mxu0 %v2737_v60 }
 0x4cf   :  { %2503 = vmatprep.subr.bf16.mxu1 %v2738_v61  ;;  %2525 = vmatprep.subr.bf16.mxu0 %v2739_v62 }
 0x551   :  { %v1701_v63 = vpop.f32.mrf.mxu1  ;;  %v1742_v0 = vpop.f32.mrf.mxu0 }
 0x552   :  { %v1831_v41 = vmul.f32 %v1701_v63, %v1701_v63  ;;  %v1833_v49 = vmul.f32 %v1742_v0, %v1742_v0 }
 0x553   :  { %v1703_v1 = vpop.f32.mrf.mxu1  ;;  %v1744_v2 = vpop.f32.mrf.mxu0 }
 0x554   :  { %v1832_v30 = vmul.f32 %v1703_v1, %v1703_v1  ;;  %v1839_v47 = vsel %vm941_vm0, %v1831_v41, 0.0  ;;  %v1842_v16 = vsel %vm941_vm0, %v1833_v49, 0.0  ;;  %v1834_v24 = vmul.f32 %v1744_v2, %v1744_v2  ;;  %v2745_v41 = vld [vmem:[#allocation2 + $0x1b0] sm:$0xff]   ;;  %v2748_v49 = vld [vmem:[#allocation2 + $0x128] sm:$0xff]  }
 0x555   :  { %v1705_v9 = vpop.f32.mrf.mxu1  ;;  %v1746_v19 = vpop.f32.mrf.mxu0 }
 0x556   :  { %v1840_v43 = vsel %vm941_vm0, %v1832_v30, 0.0  ;;  %v1844_v14 = vsel %vm941_vm0, %v1834_v24, 0.0  ;;  %v2744_v30 = vld [vmem:[#allocation2 + $0x130] sm:$0xff]   ;;  %v2751_v24 = vld [vmem:[#allocation2 + $0x1e0] sm:$0xff]  }
 0x557   :  { %v1706_v25 = vpop.f32.mrf.mxu1  ;;  %v1747_v27 = vpop.f32.mrf.mxu0  ;;  %v1841_v52 = vadd.f32 %v1840_v43, %v1839_v47  ;;  %v2746_v43 = vld [vmem:[#allocation2 + $0x168] sm:$0xff]  }
 0x558   :  { %v2740_v27 = vld [vmem:[#allocation2 + $0x138] sm:$0xff]   ;;  %v2747_v47 = vld [vmem:[#allocation2 + $0x1e8] sm:$0xff]  }
 0x559   :  { %v1843_v17 = vadd.f32 %v1842_v16, %v1841_v52  ;;  %v2749_v52 = vld [vmem:[#allocation2 + $0x1a8] sm:$0xff]   ;;  %v2750_v16 = vld [vmem:[#allocation2 + $0x160] sm:$0xff]  }
 0x55b   :  { %v1845_v21 = vadd.f32 %v1844_v14, %v1843_v17  ;;  %v2752_v17 = vld [vmem:[#allocation2 + $0x120] sm:$0xff]  }
 0x55c   :  { %v2753_v14 = vld [vmem:[#allocation2 + $0x1a0] sm:$0xff]  }
 0x571   :  { %v3344_v26 = vpop.f32.mrf.mxu1  ;;  %v3346_v28 = vpop.f32.mrf.mxu0 }
 0x572   :  { %v1835_v20 = vmul.f32 %v3344_v26, %v3344_v26  ;;  %v1837_v42 = vmul.f32 %v3346_v28, %v3346_v28 }
 0x573   :  { %v1785_v38 = vpop.f32.mrf.mxu1  ;;  %v1826_v23 = vpop.f32.mrf.mxu0 }
 0x574   :  { %v1846_v40 = vsel %vm941_vm0, %v1835_v20, 0.0  ;;  %v1836_v44 = vmul.f32 %v1785_v38, %v1785_v38  ;;  %v1838_v50 = vmul.f32 %v1826_v23, %v1826_v23  ;;  %v1850_v11 = vsel %vm941_vm0, %v1837_v42, 0.0  ;;  %v2754_v20 = vld [vmem:[#allocation2 + $0x158] sm:$0xff]   ;;  %v2759_v42 = vld [vmem:[#allocation2 + $0x1d0] sm:$0xff]  }
 0x575   :  { %v1847_v39 = vadd.f32 %v1846_v40, %v1845_v21  ;;  %v1787_v36 = vpop.f32.mrf.mxu1  ;;  %v1828_v46 = vpop.f32.mrf.mxu0  ;;  %v2755_v21 = vld [vmem:[#allocation2 + $0x1d8] sm:$0xff]   ;;  %v2758_v40 = vld [vmem:[#allocation2 + $0x150] sm:$0xff]  }
 0x576   :  { %v1848_v48 = vsel %vm941_vm0, %v1836_v44, 0.0  ;;  %v1852_v3 = vsel %vm941_vm0, %v1838_v50, 0.0  ;;  %v2760_v44 = vld [vmem:[#allocation2 + $0x110] sm:$0xff]   ;;  %v2762_v36 = vld [vmem:[#allocation2 + $0x148] sm:$0xff]  }
 0x577   :  { %v1849_v51 = vadd.f32 %v1848_v48, %v1847_v39  ;;  %v1788_v53 = vpop.f32.mrf.mxu1  ;;  %v1829_v8 = vpop.f32.mrf.mxu0  ;;  %v2761_v39 = vld [vmem:[#allocation2 + $0x190] sm:$0xff]   ;;  %v2763_v46 = vld [vmem:[#allocation2 + $0x1c8] sm:$0xff]  }
 0x578   :  { %v2764_v48 = vld [vmem:[#allocation2 + $0x108] sm:$0xff]   ;;  %v2767_v53 = vld [vmem:[#allocation2 + $0x1c0] sm:$0xff]  }
 0x579   :  { %v1851_v15 = vadd.f32 %v1850_v11, %v1849_v51  ;;  %v2765_v50 = vld [vmem:[#allocation2 + $0x188] sm:$0xff]   ;;  %v2766_v51 = vld [vmem:[#allocation2 + $0x140] sm:$0xff]  }
 0x57b   :  { %v1853_v54 = vadd.f32 %v1852_v3, %v1851_v15  ;;  %v2768_v15 = vld [vmem:[#allocation2 + $0x100] sm:$0xff]  }
 0x57c   :  { %v2769_v3 = vld [vmem:[#allocation2 + $0x180] sm:$0xff]  }
 0x57d   :  { %1854 = vadd.xlane.f32.xlu1 %v1853_v54 }
 0x606   :  { %v1855_v55 = vpop.xlane.xlu1 %1854 }
 0x607   :  { %v1856_v6 = vmax.f32 %v1855_v55, 1e-24 }
 0x609   :  { %2698 = vrsqrt.f32 %v1856_v6 }
 0x616   :  { %v3357_v7 = vpop.eup %2698 }
 0x617   :  { %v1859_v56 = vmul.f32 %v3357_v7, %v1703_v1  ;;  %v1861_v57 = vmul.f32 %v3357_v7, %v1744_v2  ;;  %v1858_v5 = vmul.f32 %v3357_v7, %v1701_v63  ;;  %v1860_v58 = vmul.f32 %v3357_v7, %v1742_v0  ;;  %v2741_v2 = vld [vmem:[#allocation2 + $0x1b8] sm:$0xff]   ;;  %v2742_v63 = vld [vmem:[#allocation2 + $0x170] sm:$0xff]  }
 0x618   :  { %v1863_v59 = vmul.f32 %v3357_v7, %v1785_v38  ;;  %v1865_v60 = vmul.f32 %v3357_v7, %v1826_v23  ;;  %v2743_v0 = vld [vmem:[#allocation2 + $0x1f0] sm:$0xff]   ;;  %v2756_v38 = vld [vmem:[#allocation2 + $0x118] sm:$0xff]   ;;  %v1862_v8 = vmul.f32 %v3357_v7, %v3344_v26  ;;  %v1864_v11 = vmul.f32 %v3357_v7, %v3346_v28 }
 0x619   :  { %v1867_v61 = vpack.c.bf16 %v1859_v56, %v1859_v56  ;;  %v1869_v62 = vpack.c.bf16 %v1861_v57, %v1861_v57  ;;  %v1866_v9 = vpack.c.bf16 %v1858_v5, %v1858_v5  ;;  %v1868_v19 = vpack.c.bf16 %v1860_v58, %v1860_v58  ;;  %v2757_v23 = vld [vmem:[#allocation2 + $0x198] sm:$0xff]  }
 0x61a   :  { %v1871_v25 = vpack.c.bf16 %v1863_v59, %v1863_v59  ;;  %v1873_v1 = vpack.c.bf16 %v1865_v60, %v1865_v60  ;;  %v1870_v54 = vpack.c.bf16 %v1862_v8, %v1862_v8  ;;  %v1872_v55 = vpack.c.bf16 %v1864_v11, %v1864_v11 }
 0x61b   :  { %1906 = vmatprep.mubr.bf16.mxu1 %v1867_v61  ;;  %1946 = vmatprep.mubr.bf16.mxu0 %v1869_v62 }
 0x61c   :  { %1907 = vmatmul.mubr.bf16.vlgmr.msra.gmra.mxu1 %v1866_v9  ;;  %1947 = vmatmul.mubr.bf16.vlgmr.msra.gmra.mxu0 %v1868_v19 }
 0x61d   :  { %2504 = vmatpush3.bf16.msra.mxu1 %v2740_v27  ;;  %2526 = vmatpush3.bf16.msra.mxu0 %v2741_v2 }
 0x61e   :  { %1986 = vmatprep.mubr.bf16.mxu1 %v1871_v25  ;;  %2026 = vmatprep.mubr.bf16.mxu0 %v1873_v1 }
 0x61f   :  { %2505 = vmatprep.subr.bf16.mxu1 %v2742_v63  ;;  %2527 = vmatprep.subr.bf16.mxu0 %v2743_v0 }
 0x621   :  { %2506 = vmatpush3.bf16.msra.mxu1 %v2744_v30  ;;  %2528 = vmatpush3.bf16.msra.mxu0 %v2745_v41 }
 0x622   :  { %2507 = vmatprep.subr.bf16.mxu1 %v2746_v43  ;;  %2529 = vmatprep.subr.bf16.mxu0 %v2747_v47 }
 0x625   :  { %2508 = vmatpush3.bf16.msra.mxu1 %v2748_v49  ;;  %2530 = vmatpush3.bf16.msra.mxu0 %v2749_v52 }
 0x626   :  { %2509 = vmatprep.subr.bf16.mxu1 %v2750_v16  ;;  %2531 = vmatprep.subr.bf16.mxu0 %v2751_v24 }
 0x629   :  { %2510 = vmatpush3.bf16.msra.mxu1 %v2752_v17  ;;  %2532 = vmatpush3.bf16.msra.mxu0 %v2753_v14 }
 0x62a   :  { %2511 = vmatprep.subr.bf16.mxu1 %v2754_v20  ;;  %2533 = vmatprep.subr.bf16.mxu0 %v2755_v21 }
 0x62d   :  { %2512 = vmatpush3.bf16.msra.mxu1 %v2756_v38  ;;  %2534 = vmatpush3.bf16.msra.mxu0 %v2757_v23 }
 0x62e   :  { %2513 = vmatprep.subr.bf16.mxu1 %v2758_v40  ;;  %2535 = vmatprep.subr.bf16.mxu0 %v2759_v42 }
 0x631   :  { %2514 = vmatpush3.bf16.msra.mxu1 %v2760_v44  ;;  %2536 = vmatpush3.bf16.msra.mxu0 %v2761_v39 }
 0x632   :  { %2515 = vmatprep.subr.bf16.mxu1 %v2762_v36  ;;  %2537 = vmatprep.subr.bf16.mxu0 %v2763_v46 }
 0x635   :  { %2516 = vmatpush3.bf16.msra.mxu1 %v2764_v48  ;;  %2538 = vmatpush3.bf16.msra.mxu0 %v2765_v50 }
 0x636   :  { %2517 = vmatprep.subr.bf16.mxu1 %v2766_v51  ;;  %2539 = vmatprep.subr.bf16.mxu0 %v2767_v53 }
 0x639   :  { %2518 = vmatpush3.bf16.msra.mxu1 %v2768_v15  ;;  %2540 = vmatpush3.bf16.msra.mxu0 %v2769_v3 }
 0x63a   :  { %2582 = vmatprep.subr.bf16.mxu1 %v2844_v12 }
 0x63c   :  { %1987 = vmatmul.mubr.bf16.vlgmr.msra.gmra.mxu1 %v1870_v54  ;;  %2027 = vmatmul.mubr.bf16.vlgmr.msra.gmra.mxu0 %v1872_v55 }
 0x63d   :  { %2583 = vmatpush3.bf16.msra.mxu1 %v3214_v4  ;;  %2598 = vmatprep.mubr.msk.bf16.mxu1 %vm2845_vm1, %v2844_v12 }
 0x63e   :  { %2584 = vmatprep.subr.bf16.mxu1 %v2844_v12 }
 0x641   :  { %2585 = vmatpush3.bf16.msra.mxu1 %v3222_v13 }
 0x642   :  { %2586 = vmatprep.subr.bf16.mxu1 %v2844_v12 }
 0x645   :  { %2587 = vmatpush3.bf16.msra.mxu1 %v3229_v18 }
 0x646   :  { %2588 = vmatprep.subr.bf16.mxu1 %v2844_v12 }
 0x649   :  { %2589 = vmatpush3.bf16.msra.mxu1 %v3236_v10 }
 0x64a   :  { %2590 = vmatprep.subr.bf16.mxu1 %v2844_v12 }
 0x64d   :  { %2591 = vmatpush3.bf16.msra.mxu1 %v3246_v31 }
 0x64e   :  { %2592 = vmatprep.subr.bf16.mxu1 %v2844_v12 }
 0x651   :  { %2593 = vmatpush3.bf16.msra.mxu1 %v3253_v32 }
 0x652   :  { %2594 = vmatprep.subr.bf16.mxu1 %v2844_v12 }
 0x655   :  { %2595 = vmatpush3.bf16.msra.mxu1 %v3260_v35 }
 0x656   :  { %2596 = vmatprep.subr.bf16.mxu1 %v2844_v12 }
 0x659   :  { %2597 = vmatpush3.bf16.msra.mxu1 %v3267_v37 }
 0x6dc   :  { %v2475_v4 = vpop.f32.mrf.mxu1  ;;  %v2497_v13 = vpop.f32.mrf.mxu0 }
 0x6de   :  { %v2476_v18 = vpop.f32.mrf.mxu1  ;;  %v2498_v10 = vpop.f32.mrf.mxu0 }
 0x6df   :  { %v2477_v7 = vadd.f32 %v2476_v18, %v2475_v4  ;;  %v2499_v56 = vadd.f32 %v2498_v10, %v2497_v13 }
 0x6e0   :  { %v2478_v26 = vpop.f32.mrf.mxu1  ;;  %v2500_v28 = vpop.f32.mrf.mxu0 }
 0x6e1   :  { %v1949_v59 = vadd.f32 %v2499_v56, %v2477_v7 }
 0x6e2   :  { %v2479_v6 = vpop.f32.mrf.mxu1  ;;  %v2501_v31 = vpop.f32.mrf.mxu0 }
 0x6fc   :  { %v2519_v57 = vpop.f32.mrf.mxu1  ;;  %v2541_v32 = vpop.f32.mrf.mxu0 }
 0x6fe   :  { %v2520_v5 = vpop.f32.mrf.mxu1  ;;  %v2542_v58 = vpop.f32.mrf.mxu0 }
 0x6ff   :  { %v2521_v35 = vadd.f32 %v2520_v5, %v2519_v57  ;;  %v2543_v37 = vadd.f32 %v2542_v58, %v2541_v32 }
 0x700   :  { %v2522_v60 = vpop.f32.mrf.mxu1  ;;  %v2544_v12 = vpop.f32.mrf.mxu0 }
 0x701   :  { %v1989_v61 = vadd.f32 %v2521_v35, %v1949_v59 }
 0x702   :  { %v2523_v62 = vpop.f32.mrf.mxu1  ;;  %v2545_v9 = vpop.f32.mrf.mxu0 }
 0x703   :  { %v2029_v19 = vadd.f32 %v2543_v37, %v1989_v61 }
 0x705   :  { %v2034_v25 = vmul.f32 3.5, %v2029_v19 }
 0x707   :  { %v2035_v1 = vadd.f32 %v2034_v25, %v3239_v22 }
 0x709   :  { %v2036_v27 = vmax.f32 %v2035_v1, 0.0 }
 0x70b   :  { %v2037_v2 = vpack.c.bf16 %v2036_v27, %v2036_v27 }
 0x70d   :  { %2599 = vmatmul.mubr.bf16.vlgmr.msra.gmra.mxu1 %v2037_v2 }
 0x7cd   :  { %v2072_v63 = vpop.f32.mrf.mxu1 }
 0x7ce   :  { %v2073_v0 = vadd.f32 %v3288_v33, %v2072_v63 }
 0x7cf   :  { %v2600_v30 = vpop.f32.mrf.mxu1 }
 0x7d0   :  { %v2078_v41 = vsel %vm328_vm2, %v2073_v0, -inf }
 0x7d1   :  { %2079 = vmax.xlane.f32.xlu0 %v2078_v41  ;;  %v2075_v43 = vpop.f32.mrf.mxu1 }
 0x7d3   :  { %v2601_v47 = vpop.f32.mrf.mxu1 }
 0x85a   :  { %v2080_v49 = vpop.xlane.xlu0 %2079 }
 0x85b   :  { %v2081_v52 = vsub.f32 %v2073_v0, %v2080_v49 }
 0x85d   :  { %v2082_v16 = vmul.f32 1.442695, %v2081_v52 }
 0x85f   :  { %2700 = vpow2.f32 %v2082_v16 }
 0x860   :  { %2702 = vlog2.f32 %v3311_v34 }
 0x86c   :  { %v2701_v24 = vpop.eup %2700 }
 0x86d   :  { %v2084_v17 = vsel %vm328_vm2, %v2701_v24, 0.0  ;;  %v2703_v14 = vpop.eup %2702 }
 0x86e   :  { %2085 = vadd.xlane.f32.xlu1 %v2084_v17  ;;  %v341_v33 = vmul.f32 0.6931472, %v2703_v14 }
 0x870   :  { %v342_v23 = vsub.f32 %v3282_v29, %v341_v33 }
 0x8f7   :  { %v2086_v22 = vpop.xlane.xlu1 %2085 }
 0x8f8   :  { %2704 = vlog2.f32 %v2086_v22 }
 0x905   :  { %v2705_v20 = vpop.eup %2704 }
 0x906   :  { %v2088_v21 = vmul.f32 0.6931472, %v2705_v20 }
 0x908   :  { %v2089_v38 = vsub.f32 %v2081_v52, %v2088_v21 }
 0x90a   :  { %v2090_v40 = vsub.f32 %v342_v23, %v2089_v38 }
 0x90c   :  { %v2091_v42 = vmul.f32 %v2090_v40, %v3316_v45 }
 0x90e   :  { %v2092_v44 = vsel %vm328_vm2, %v2091_v42, 0.0 }
 0x90f   :  { %2093 = vadd.xlane.f32.xlu0 %v2092_v44 }
 0x998   :  { %v2094_v39 = vpop.xlane.xlu0 %2093 }
 0x999   :  { %v2095_v36 = vsel %vm941_vm0, %v2094_v39, 0.0 }
 0x99a   :  { %v2096_v46 = vrot.slane %v2095_v36, 4 }
 0x99c   :  { %v2097_v34 = vadd.f32 %v2096_v46, %v2095_v36 }
 0x99e   :  { %v2098_v48 = vrot.slane %v2097_v34, 2 }
 0x9a0   :  { %v2099_v50 = vadd.f32 %v2098_v48, %v2097_v34 }
 0x9a2   :  { %v2100_v51 = vrot.slane %v2099_v50, 1 }
 0x9a4   :  { %v2101_v53 = vadd.f32 %v2100_v51, %v2099_v50 }
 0x9a6   :  { %v2102_v8 = vmul.f32 0.5, %v2101_v53 }
 0x9a8   :  { %2104 = vst.msk [vmem:[#allocation7] sm:$0x1] %vm2103_vm7, %v2102_v8 }
 0x9a9   :  { %2821 = shalt.err (!%p2818_p0)
}
 0x9aa   :  { %2114 = dma.vmem_to_hbm [thread:$0]  %s2112_s4, 16, %s3408_s9, [#allocation4]  }
 0x9ab   :  { %2834 = dma.done.wait [#allocation4], 16  }
 0x9ac   :  { %2835 = vsyncadd [#allocation4], 4294967280 }
 0x9ad   :  { %2118 = vsyncpa [#allocation3], 1 }
 0x9ae   :  { %2119 = vsyncpa [#allocation6], 1 }
 0x9af   :  { %2120 = vsyncpa [#allocation4], 1 }

</bundles_post_ra>
